<compile_context>
chip_gen: v7x
topology: tpu7x:2x2x1
jax: 0.10.0
libtpu: 0.0.40
codegen_flags: <defaults>
</compile_context>

<pallas_src>
import functools

import jax
import jax.numpy as jnp
from jax import lax
from jax.experimental import pallas as pl
from jax.experimental.pallas import tpu as pltpu

# ------------------------- module hyper-parameters -------------------------
DIM_IN = 16       # input channels (dim_in)
DIM_OUT = 32      # output channels (dim_out); divisible by N_GROUPS and NUM_HEADS
COND_DIM = 24     # condition latent dim (cond_dim)
TIME_DIM = 16     # time-embedding dim (time_dim)
KSIZE = 5         # ResidualTemporalBlock default kernel_size
PAD = KSIZE // 2
N_GROUPS = 8      # ResidualTemporalBlock default n_groups
NUM_HEADS = 8     # cross-attention heads
EPS = 1e-5

# rows of the packed per-channel-vector slab (f32, [9, 2*DIM_OUT])
VB0, VB1, VG1G, VG1B, VRESB, VLNG, VLNB, VBQ, VBKV = range(9)

# row offsets inside the packed bf16 weight slab [288, DIM_OUT]
_W0_OFF = 0
_W1_OFF = KSIZE * DIM_IN                       # 80
_RES_OFF = _W1_OFF + KSIZE * DIM_OUT           # 240
_WQ_OFF = _RES_OFF + DIM_IN                    # 256
_W_ROWS = _WQ_OFF + DIM_OUT                    # 288


# ----------------------------- small JAX glue -------------------------------
def mish_ref(v):
    return v * jnp.tanh(jax.nn.softplus(v))


def layer_norm(v, gamma, beta):
    mean = jnp.mean(v, axis=-1, keepdims=True)
    var = jnp.mean((v - mean) ** 2, axis=-1, keepdims=True)
    return (v - mean) * lax.rsqrt(var + EPS) * gamma + beta


def _pick_nb(B, L, rows_target=512):
    """Batch elements packed per grid step (divisor of B, keeps >=2 steps)."""
    if B <= 1 or L % 8 != 0:
        return 1
    cap = max(1, min(B // 2, rows_target // max(L, 1)))
    nb = 1
    for d in range(1, cap + 1):
        if B % d == 0:
            nb = d
    return nb


# ----------------------------- fused Pallas kernel ---------------------------
def _fused_kernel(cmask_ref, x_ref, cn_ref, eg0_ref, eb0_ref,
                  wmat_ref, wkv_ref, masks_ref, vec_ref, o_ref,
                  *, nb, length, n_cond, ksize):
    """nb batch elements: conv block x2 -> 1x1 residual conv -> cross-attn."""
    L, N = length, n_cond
    R = nb * L
    half = ksize // 2
    Cin, C = DIM_IN, DIM_OUT
    f32, bf16 = jnp.float32, jnp.bfloat16

    gmat = masks_ref[0]                          # [C, C] bf16 block-diag 1/gsize
    hmat = masks_ref[1]                          # [C, C] bf16 head-block 0/1 mask

    def vrow(i, w=C):
        return vec_ref[i:i + 1, :w]              # [1, w] f32

    def group_norm(a, gamma, beta):
        # per-row GroupNorm over channel groups (matches '(batch horizon) channels')
        mean = jnp.dot(a.astype(bf16), gmat, preferred_element_type=f32)
        cen = a - mean
        var = jnp.dot((cen * cen).astype(bf16), gmat, preferred_element_type=f32)
        return cen * lax.rsqrt(var + EPS) * gamma + beta

    def mish(v):
        # v * tanh(softplus(v)) == v * ((1+e)^2 - 1) / ((1+e)^2 + 1), e = exp(v)
        e = jnp.exp(jnp.minimum(v, 20.0))
        t = (1.0 + e) * (1.0 + e)
        return v * (t - 1.0) * pl.reciprocal(t + 1.0, approx=True)

    # within-batch position of every row (so conv padding never leaks across
    # batch boundaries when nb > 1)
    if nb == 1:
        pos = lax.broadcasted_iota(jnp.int32, (R, 1), 0)
    else:
        pos = lax.broadcasted_iota(jnp.int32, (nb, L, 1), 1).reshape(R, 1)

    def conv_taps(h):
        """K rolled+masked copies concatenated along lanes -> [R, K*ch] bf16."""
        taps = []
        for k in range(ksize):
            s = half - k                         # jnp.roll-style shift
            if s == 0:
                taps.append(h)
                continue
            sh = pltpu.roll(h, shift=s % R, axis=0)
            valid = (pos >= s) if s > 0 else (pos < L + s)
            taps.append(jnp.where(valid, sh, 0.0))
        return jnp.concatenate(taps, axis=-1).astype(bf16)

    # ----- Conv1dAdaGNBlock: conv -> GroupNorm (ada scale/shift folded) -> Mish
    x = x_ref[...].reshape(R, Cin)                               # [R, Cin] f32
    a0 = jnp.dot(conv_taps(x), wmat_ref[_W0_OFF:_W1_OFF, :],
                 preferred_element_type=f32) + vrow(VB0)
    if nb == 1:
        eg0, eb0 = eg0_ref[0], eb0_ref[0]                        # [1, C]
    else:
        eg0 = jnp.broadcast_to(eg0_ref[...], (nb, L, C)).reshape(R, C)
        eb0 = jnp.broadcast_to(eb0_ref[...], (nb, L, C)).reshape(R, C)
    h0 = mish(group_norm(a0, eg0, eb0))                          # [R, C]

    # ----- Conv1dBlock: conv -> GroupNorm -> Mish
    a1 = jnp.dot(conv_taps(h0), wmat_ref[_W1_OFF:_RES_OFF, :],
                 preferred_element_type=f32) + vrow(VB1)
    h1 = mish(group_norm(a1, vrow(VG1G), vrow(VG1B)))
    # TODO(synk): nn.Dropout after this block is identity in eval mode.

    # ----- residual 1x1 conv + add
    res = jnp.dot(x.astype(bf16), wmat_ref[_RES_OFF:_WQ_OFF, :],
                  preferred_element_type=f32) + vrow(VRESB)
    out = h1 + res                                               # [R, C]

    # ----- LinearCrossAttention
    mu = jnp.mean(out, axis=-1, keepdims=True)
    var = jnp.mean((out - mu) ** 2, axis=-1, keepdims=True)
    xn = (out - mu) * lax.rsqrt(var + EPS) * vrow(VLNG) + vrow(VLNB)

    q = jnp.dot(xn.astype(bf16), wmat_ref[_WQ_OFF:_W_ROWS, :],
                preferred_element_type=f32) + vrow(VBQ)          # [R, C]
    # per-head softmax over head channels; the global row-max shift is
    # head-invariant, per-head denominators come from the head-block matmul.
    qe = jnp.exp(q - jnp.max(q, axis=-1, keepdims=True))
    qden = jnp.dot(qe.astype(bf16), hmat, preferred_element_type=f32)
    qs = qe * pl.reciprocal(qden, approx=True)                   # [R, C]

    # fused key|value projection for all nb batch elements in one matmul
    if nb == 1 or N % 8 == 0:
        cn = cn_ref[...].reshape(nb * N, COND_DIM)
        kv_all = jnp.dot(cn.astype(bf16), wkv_ref[...],
                         preferred_element_type=f32) + vrow(VBKV, 2 * C)
    else:
        kv_all = None

    base = pl.program_id(0) * nb
    hmat_f = hmat.astype(f32)
    for j in range(nb):                                          # tiny per-batch tail
        if kv_all is None:
            kv_j = jnp.dot(cn_ref[j].astype(bf16), wkv_ref[...],
                           preferred_element_type=f32) + vrow(VBKV, 2 * C)
        else:
            kv_j = kv_all[j * N:(j + 1) * N, :]                  # [N, 2C]
        kk, vv = kv_j[:, :C], kv_j[:, C:]
        # key: softmax over the condition-sequence axis
        kk = jnp.exp(kk - jnp.max(kk, axis=0, keepdims=True))
        kk = kk * pl.reciprocal(jnp.sum(kk, axis=0, keepdims=True), approx=True)
        # att = blockdiag_h(k_h^T v_h) == (k^T v) masked to head blocks
        att = lax.dot_general(kk.astype(bf16), vv.astype(bf16),
                              (((0,), (0,)), ((), ())),
                              preferred_element_type=f32) * hmat_f
        y = jnp.dot(qs[j * L:(j + 1) * L, :].astype(bf16), att.astype(bf16),
                    preferred_element_type=f32)                  # [L, C]
        # TODO(synk): attention dropout is identity in eval mode.
        # masked residual add (cond_indices membership, scalar from SMEM)
        m = cmask_ref[base + j].astype(f32)
        res_j = out[j * L:(j + 1) * L, :] + m * y
        # lane-dense store: write PyTorch NCL layout [C, L] directly
        o_ref[j] = jnp.transpose(res_j).astype(o_ref.dtype)


# ------------------------------- full forward --------------------------------
def cond_conv1d_block_forward(params, x, t, cond, cond_indices):
    """
    x:    [B, DIM_IN, L]   (PyTorch NCL)
    t:    [B, TIME_DIM]
    cond: [B, N, COND_DIM]
    returns [B, DIM_OUT, L]
    """
    B, _, L = x.shape
    C = DIM_OUT
    N = cond.shape[1]
    x_lc = jnp.transpose(x, (0, 2, 1)).astype(jnp.float32)       # [B, L, Cin]

    # time_mlp: Mish -> Linear; chunk(2) -> (scale, shift); fold ada into the
    # GroupNorm affine:  (y*g + b)*(1+s) + sh == y*(g*(1+s)) + (b*(1+s) + sh)
    ts = mish_ref(t) @ params["time_w"] + params["time_b"]       # [B, 2*C]
    scale = ts[:, :C][:, None, :]                                # [B, 1, C]
    shift = ts[:, C:][:, None, :]
    eg0 = params["gn0_g"][None, :, :] * (1.0 + scale)
    eb0 = params["gn0_b"][None, :, :] * (1.0 + scale) + shift

    # condition-side LayerNorm (tiny, plain JAX) + cond_indices membership mask
    cn = layer_norm(cond, params["ln_c_g"], params["ln_c_b"])    # [B, N, COND_DIM]
    cmask = jnp.zeros((B,), jnp.int32).at[cond_indices].set(1)   # scalar prefetch

    nb = _pick_nb(B, L)
    G = B // nb

    kernel = functools.partial(_fused_kernel, nb=nb, length=L, n_cond=N,
                               ksize=KSIZE)
    per_b = lambda g, m: (g, 0, 0)
    bc2 = lambda g, m: (0, 0)
    bc3 = lambda g, m: (0, 0, 0)

    out = pl.pallas_call(
        kernel,
        out_shape=jax.ShapeDtypeStruct((B, C, L), jnp.float32),
        grid_spec=pltpu.PrefetchScalarGridSpec(
            num_scalar_prefetch=1,
            grid=(G,),
            in_specs=[
                pl.BlockSpec((nb, L, DIM_IN), per_b),      # x (channels-last)
                pl.BlockSpec((nb, N, COND_DIM), per_b),    # layer-normed cond
                pl.BlockSpec((nb, 1, C), per_b),           # eff gamma0 (ada folded)
                pl.BlockSpec((nb, 1, C), per_b),           # eff beta0  (ada folded)
                pl.BlockSpec((_W_ROWS, C), bc2),           # packed bf16 weights
                pl.BlockSpec((COND_DIM, 2 * C), bc2),      # fused wk|wv (bf16)
                pl.BlockSpec((2, C, C), bc3),              # gmat | hmat (bf16)
                pl.BlockSpec((9, 2 * C), bc2),             # packed f32 vectors
            ],
            out_specs=pl.BlockSpec((nb, C, L), per_b),
        ),
        compiler_params=pltpu.CompilerParams(
            dimension_semantics=("parallel",)),
    )(cmask, x_lc, cn, eg0, eb0,
      params["wmat"], params["wkv"], params["masks"], params["vecs"])

    return out                                                   # [B, C, L]


# ------------------------------ parameter init --------------------------------
def init_params(key):
    keys = jax.random.split(key, 24)

    def nrm(k, shape, s=0.1):
        return (s * jax.random.normal(k, shape)).astype(jnp.float32)

    C, Cin = DIM_OUT, DIM_IN
    bf = jnp.bfloat16
    p = {}

    # Conv1dAdaGNBlock(dim_in, dim_out, 5, n_groups=8): conv weight [k*Cin, C]
    w0 = nrm(keys[0], (KSIZE * Cin, C))
    b0 = nrm(keys[1], (C,))
    p["gn0_g"] = 1.0 + nrm(keys[2], (1, C))
    p["gn0_b"] = nrm(keys[3], (1, C))
    # Conv1dBlock(dim_out, dim_out, 5, n_groups=8)
    # (reference zero-inits these when zero=True; small random used instead)
    w1 = nrm(keys[4], (KSIZE * C, C))
    b1 = nrm(keys[5], (C,))
    gn1_g = 1.0 + nrm(keys[6], (C,))
    gn1_b = nrm(keys[7], (C,))
    # time_mlp Linear(time_dim, 2*dim_out)
    p["time_w"] = nrm(keys[8], (TIME_DIM, 2 * C))
    p["time_b"] = nrm(keys[9], (2 * C,))
    # residual 1x1 conv (dim_in != dim_out)
    res_w = nrm(keys[10], (Cin, C))
    res_b = nrm(keys[11], (C,))
    # LinearCrossAttention
    ln_x_g = 1.0 + nrm(keys[12], (C,))
    ln_x_b = nrm(keys[13], (C,))
    p["ln_c_g"] = 1.0 + nrm(keys[14], (COND_DIM,))
    p["ln_c_b"] = nrm(keys[15], (COND_DIM,))
    wq = nrm(keys[16], (C, C))
    bq = nrm(keys[17], (C,))
    wk = nrm(keys[18], (COND_DIM, C))
    bk = nrm(keys[19], (C,))
    wv = nrm(keys[20], (COND_DIM, C))
    bv = nrm(keys[21], (C,))

    # -------- packed slabs consumed by the kernel --------
    p["wmat"] = jnp.concatenate([w0, w1, res_w, wq], axis=0).astype(bf)  # [288, C]
    p["wkv"] = jnp.concatenate([wk, wv], axis=1).astype(bf)              # [24, 2C]

    gsize = C // N_GROUPS
    gmat = jnp.kron(jnp.eye(N_GROUPS, dtype=jnp.float32),
                    jnp.full((gsize, gsize), 1.0 / gsize, dtype=jnp.float32))
    dh = C // NUM_HEADS
    hmat = jnp.kron(jnp.eye(NUM_HEADS, dtype=jnp.float32),
                    jnp.ones((dh, dh), dtype=jnp.float32))
    p["masks"] = jnp.stack([gmat, hmat], axis=0).astype(bf)              # [2, C, C]

    pad = lambda v: jnp.concatenate([v, jnp.zeros((C,), jnp.float32)])
    p["vecs"] = jnp.stack([pad(b0), pad(b1), pad(gn1_g), pad(gn1_b), pad(res_b),
                           pad(ln_x_g), pad(ln_x_b), pad(bq),
                           jnp.concatenate([bk, bv])], axis=0)           # [9, 2C]
    return p


# ------------------------------------ main -----------------------------------
if __name__ == "__main__":
    key = jax.random.PRNGKey(0)
    kp, kx, kt, kc = jax.random.split(key, 4)
    params = init_params(kp)

    B, L, N = 2, 16, 8
    x = jax.random.normal(kx, (B, DIM_IN, L), dtype=jnp.float32)
    t = jax.random.normal(kt, (B, TIME_DIM), dtype=jnp.float32)
    cond = jax.random.normal(kc, (B, N, COND_DIM), dtype=jnp.float32)
    cond_indices = jnp.arange(B, dtype=jnp.int32)

    fwd = jax.jit(functools.partial(cond_conv1d_block_forward, params))
    out = fwd(x, t, cond, cond_indices)
    jax.block_until_ready(out)
    assert out.shape == (B, DIM_OUT, L), out.shape
    assert bool(jnp.all(jnp.isfinite(out)))
    print("KERNEL_OK")
</pallas_src>

<mosaic_0001>
module attributes {stable_mosaic.version = 11 : i64} {
  func.func @_fused_kernel(%arg0: i32, %arg1: memref<2xi32, #tpu.memory_space<smem>>, %arg2: memref<1x16x16xf32, #tpu.memory_space<vmem>>, %arg3: memref<1x8x24xf32, #tpu.memory_space<vmem>>, %arg4: memref<1x1x32xf32, #tpu.memory_space<vmem>>, %arg5: memref<1x1x32xf32, #tpu.memory_space<vmem>>, %arg6: memref<288x32xbf16, #tpu.memory_space<vmem>>, %arg7: memref<24x64xbf16, #tpu.memory_space<vmem>>, %arg8: memref<2x32x32xbf16, #tpu.memory_space<vmem>>, %arg9: memref<9x64xf32, #tpu.memory_space<vmem>>, %arg10: memref<1x32x16xf32, #tpu.memory_space<vmem>>) attributes {dimension_semantics = [#tpu.dimension_semantics<parallel>], iteration_bounds = array<i64: 2>, scalar_prefetch = 1 : i64, scratch_operands = 0 : i64, tpu.core_type = #tpu.core_type<tc>, window_params = [{transform_indices = @transform_0, window_bounds = array<i64: 1, 16, 16>}, {transform_indices = @transform_1, window_bounds = array<i64: 1, 8, 24>}, {transform_indices = @transform_2, window_bounds = array<i64: 1, 1, 32>}, {transform_indices = @transform_3, window_bounds = array<i64: 1, 1, 32>}, {pipeline_mode = #tpu.pipeline_mode<synchronous>, transform_indices = @transform_4, window_bounds = array<i64: 288, 32>}, {pipeline_mode = #tpu.pipeline_mode<synchronous>, transform_indices = @transform_5, window_bounds = array<i64: 24, 64>}, {pipeline_mode = #tpu.pipeline_mode<synchronous>, transform_indices = @transform_6, window_bounds = array<i64: 2, 32, 32>}, {pipeline_mode = #tpu.pipeline_mode<synchronous>, transform_indices = @transform_7, window_bounds = array<i64: 9, 64>}, {transform_indices = @transform_8, window_bounds = array<i64: 1, 32, 16>}]} {
    %c0 = arith.constant 0 : index
    %c0_0 = arith.constant 0 : index
    %c0_1 = arith.constant 0 : index
    %0 = vector.load %arg8[%c0, %c0_0, %c0_1] : memref<2x32x32xbf16, #tpu.memory_space<vmem>>, vector<1x32x32xbf16>
    %1 = vector.shape_cast %0 : vector<1x32x32xbf16> to vector<32x32xbf16>
    %c1 = arith.constant 1 : index
    %c0_2 = arith.constant 0 : index
    %c0_3 = arith.constant 0 : index
    %2 = vector.load %arg8[%c1, %c0_2, %c0_3] : memref<2x32x32xbf16, #tpu.memory_space<vmem>>, vector<1x32x32xbf16>
    %3 = vector.shape_cast %2 : vector<1x32x32xbf16> to vector<32x32xbf16>
    %4 = tpu.iota {dimensions = array<i32: 0>} : vector<16x1xi32>
    %c0_4 = arith.constant 0 : index
    %c0_5 = arith.constant 0 : index
    %c0_6 = arith.constant 0 : index
    %5 = vector.load %arg2[%c0_4, %c0_5, %c0_6] : memref<1x16x16xf32, #tpu.memory_space<vmem>>, vector<1x16x16xf32>
    %6 = vector.shape_cast %5 : vector<1x16x16xf32> to vector<16x16xf32>
    %c2_i32 = arith.constant 2 : i32
    %7 = tpu.dynamic_rotate %6 by %c2_i32 dim 0 : vector<16x16xf32>, i32 -> vector<16x16xf32>
    %c2_i32_7 = arith.constant 2 : i32
    %8 = vector.broadcast %c2_i32_7 : i32 to vector<16x1xi32>
    %9 = arith.cmpi sge, %4, %8 : vector<16x1xi32>
    %cst = arith.constant 0.000000e+00 : f32
    %10 = vector.shape_cast %9 : vector<16x1xi1> to vector<16x1xi1>
    %11 = vector.broadcast %10 : vector<16x1xi1> to vector<16x16xi1>
    %12 = vector.broadcast %cst : f32 to vector<16x16xf32>
    %13 = arith.select %11, %7, %12 : vector<16x16xi1>, vector<16x16xf32>
    %c1_i32 = arith.constant 1 : i32
    %14 = tpu.dynamic_rotate %6 by %c1_i32 dim 0 : vector<16x16xf32>, i32 -> vector<16x16xf32>
    %c1_i32_8 = arith.constant 1 : i32
    %15 = vector.broadcast %c1_i32_8 : i32 to vector<16x1xi32>
    %16 = arith.cmpi sge, %4, %15 : vector<16x1xi32>
    %cst_9 = arith.constant 0.000000e+00 : f32
    %17 = vector.shape_cast %16 : vector<16x1xi1> to vector<16x1xi1>
    %18 = vector.broadcast %17 : vector<16x1xi1> to vector<16x16xi1>
    %19 = vector.broadcast %cst_9 : f32 to vector<16x16xf32>
    %20 = arith.select %18, %14, %19 : vector<16x16xi1>, vector<16x16xf32>
    %c15_i32 = arith.constant 15 : i32
    %21 = tpu.dynamic_rotate %6 by %c15_i32 dim 0 : vector<16x16xf32>, i32 -> vector<16x16xf32>
    %c15_i32_10 = arith.constant 15 : i32
    %22 = vector.broadcast %c15_i32_10 : i32 to vector<16x1xi32>
    %23 = arith.cmpi slt, %4, %22 : vector<16x1xi32>
    %cst_11 = arith.constant 0.000000e+00 : f32
    %24 = vector.shape_cast %23 : vector<16x1xi1> to vector<16x1xi1>
    %25 = vector.broadcast %24 : vector<16x1xi1> to vector<16x16xi1>
    %26 = vector.broadcast %cst_11 : f32 to vector<16x16xf32>
    %27 = arith.select %25, %21, %26 : vector<16x16xi1>, vector<16x16xf32>
    %c14_i32 = arith.constant 14 : i32
    %28 = tpu.dynamic_rotate %6 by %c14_i32 dim 0 : vector<16x16xf32>, i32 -> vector<16x16xf32>
    %c14_i32_12 = arith.constant 14 : i32
    %29 = vector.broadcast %c14_i32_12 : i32 to vector<16x1xi32>
    %30 = arith.cmpi slt, %4, %29 : vector<16x1xi32>
    %cst_13 = arith.constant 0.000000e+00 : f32
    %31 = vector.shape_cast %30 : vector<16x1xi1> to vector<16x1xi1>
    %32 = vector.broadcast %31 : vector<16x1xi1> to vector<16x16xi1>
    %33 = vector.broadcast %cst_13 : f32 to vector<16x16xf32>
    %34 = arith.select %32, %28, %33 : vector<16x16xi1>, vector<16x16xf32>
    %35 = tpu.concatenate %13, %20, %6, %27, %34 in 1 : vector<16x16xf32>, vector<16x16xf32>, vector<16x16xf32>, vector<16x16xf32>, vector<16x16xf32> -> vector<16x80xf32>
    %36 = arith.truncf %35 : vector<16x80xf32> to vector<16x80xbf16>
    %c0_14 = arith.constant 0 : index
    %c0_15 = arith.constant 0 : index
    %37 = vector.load %arg6[%c0_14, %c0_15] : memref<288x32xbf16, #tpu.memory_space<vmem>>, vector<80x32xbf16>
    %cst_16 = arith.constant dense<0.000000e+00> : vector<16x32xf32>
    %38 = tpu.matmul %36, %37, %cst_16 {dimension_numbers = #tpu.dot_dimension_numbers<[1], [0], [0], [1], [0, 0, 1, 1], [], []>} : vector<16x80xbf16>, vector<80x32xbf16>, vector<16x32xf32> -> vector<16x32xf32>
    %c0_17 = arith.constant 0 : index
    %c0_18 = arith.constant 0 : index
    %39 = vector.load %arg9[%c0_17, %c0_18] : memref<9x64xf32, #tpu.memory_space<vmem>>, vector<1x32xf32>
    %40 = vector.broadcast %39 : vector<1x32xf32> to vector<16x32xf32>
    %41 = arith.addf %38, %40 : vector<16x32xf32>
    %c0_19 = arith.constant 0 : index
    %c0_20 = arith.constant 0 : index
    %c0_21 = arith.constant 0 : index
    %42 = vector.load %arg4[%c0_19, %c0_20, %c0_21] : memref<1x1x32xf32, #tpu.memory_space<vmem>>, vector<1x1x32xf32>
    %43 = vector.shape_cast %42 : vector<1x1x32xf32> to vector<1x32xf32>
    %c0_22 = arith.constant 0 : index
    %c0_23 = arith.constant 0 : index
    %c0_24 = arith.constant 0 : index
    %44 = vector.load %arg5[%c0_22, %c0_23, %c0_24] : memref<1x1x32xf32, #tpu.memory_space<vmem>>, vector<1x1x32xf32>
    %45 = vector.shape_cast %44 : vector<1x1x32xf32> to vector<1x32xf32>
    %46 = arith.truncf %41 : vector<16x32xf32> to vector<16x32xbf16>
    %cst_25 = arith.constant dense<0.000000e+00> : vector<16x32xf32>
    %47 = tpu.matmul %46, %1, %cst_25 {dimension_numbers = #tpu.dot_dimension_numbers<[1], [0], [0], [1], [0, 0, 1, 1], [], []>} : vector<16x32xbf16>, vector<32x32xbf16>, vector<16x32xf32> -> vector<16x32xf32>
    %48 = arith.subf %41, %47 : vector<16x32xf32>
    %49 = arith.mulf %48, %48 : vector<16x32xf32>
    %50 = arith.truncf %49 : vector<16x32xf32> to vector<16x32xbf16>
    %cst_26 = arith.constant dense<0.000000e+00> : vector<16x32xf32>
    %51 = tpu.matmul %50, %1, %cst_26 {dimension_numbers = #tpu.dot_dimension_numbers<[1], [0], [0], [1], [0, 0, 1, 1], [], []>} : vector<16x32xbf16>, vector<32x32xbf16>, vector<16x32xf32> -> vector<16x32xf32>
    %cst_27 = arith.constant 9.99999974E-6 : f32
    %52 = vector.broadcast %cst_27 : f32 to vector<16x32xf32>
    %53 = arith.addf %51, %52 : vector<16x32xf32>
    %54 = math.rsqrt %53 : vector<16x32xf32>
    %55 = arith.mulf %48, %54 : vector<16x32xf32>
    %56 = vector.broadcast %43 : vector<1x32xf32> to vector<16x32xf32>
    %57 = arith.mulf %55, %56 : vector<16x32xf32>
    %58 = vector.broadcast %45 : vector<1x32xf32> to vector<16x32xf32>
    %59 = arith.addf %57, %58 : vector<16x32xf32>
    %cst_28 = arith.constant 2.000000e+01 : f32
    %60 = vector.broadcast %cst_28 : f32 to vector<16x32xf32>
    %61 = arith.minimumf %59, %60 : vector<16x32xf32>
    %62 = math.exp %61 : vector<16x32xf32>
    %cst_29 = arith.constant 1.000000e+00 : f32
    %63 = vector.broadcast %cst_29 : f32 to vector<16x32xf32>
    %64 = arith.addf %63, %62 : vector<16x32xf32>
    %cst_30 = arith.constant 1.000000e+00 : f32
    %65 = vector.broadcast %cst_30 : f32 to vector<16x32xf32>
    %66 = arith.addf %65, %62 : vector<16x32xf32>
    %67 = arith.mulf %64, %66 : vector<16x32xf32>
    %cst_31 = arith.constant 1.000000e+00 : f32
    %68 = vector.broadcast %cst_31 : f32 to vector<16x32xf32>
    %69 = arith.subf %67, %68 : vector<16x32xf32>
    %70 = arith.mulf %59, %69 : vector<16x32xf32>
    %cst_32 = arith.constant 1.000000e+00 : f32
    %71 = vector.broadcast %cst_32 : f32 to vector<16x32xf32>
    %72 = arith.addf %67, %71 : vector<16x32xf32>
    %73 = tpu.reciprocal %72 {approx = true} : vector<16x32xf32> -> vector<16x32xf32>
    %74 = arith.mulf %70, %73 : vector<16x32xf32>
    %c2_i32_33 = arith.constant 2 : i32
    %75 = tpu.dynamic_rotate %74 by %c2_i32_33 dim 0 : vector<16x32xf32>, i32 -> vector<16x32xf32>
    %c2_i32_34 = arith.constant 2 : i32
    %76 = vector.broadcast %c2_i32_34 : i32 to vector<16x1xi32>
    %77 = arith.cmpi sge, %4, %76 : vector<16x1xi32>
    %cst_35 = arith.constant 0.000000e+00 : f32
    %78 = vector.shape_cast %77 : vector<16x1xi1> to vector<16x1xi1>
    %79 = vector.broadcast %78 : vector<16x1xi1> to vector<16x32xi1>
    %80 = vector.broadcast %cst_35 : f32 to vector<16x32xf32>
    %81 = arith.select %79, %75, %80 : vector<16x32xi1>, vector<16x32xf32>
    %c1_i32_36 = arith.constant 1 : i32
    %82 = tpu.dynamic_rotate %74 by %c1_i32_36 dim 0 : vector<16x32xf32>, i32 -> vector<16x32xf32>
    %c1_i32_37 = arith.constant 1 : i32
    %83 = vector.broadcast %c1_i32_37 : i32 to vector<16x1xi32>
    %84 = arith.cmpi sge, %4, %83 : vector<16x1xi32>
    %cst_38 = arith.constant 0.000000e+00 : f32
    %85 = vector.shape_cast %84 : vector<16x1xi1> to vector<16x1xi1>
    %86 = vector.broadcast %85 : vector<16x1xi1> to vector<16x32xi1>
    %87 = vector.broadcast %cst_38 : f32 to vector<16x32xf32>
    %88 = arith.select %86, %82, %87 : vector<16x32xi1>, vector<16x32xf32>
    %c15_i32_39 = arith.constant 15 : i32
    %89 = tpu.dynamic_rotate %74 by %c15_i32_39 dim 0 : vector<16x32xf32>, i32 -> vector<16x32xf32>
    %c15_i32_40 = arith.constant 15 : i32
    %90 = vector.broadcast %c15_i32_40 : i32 to vector<16x1xi32>
    %91 = arith.cmpi slt, %4, %90 : vector<16x1xi32>
    %cst_41 = arith.constant 0.000000e+00 : f32
    %92 = vector.shape_cast %91 : vector<16x1xi1> to vector<16x1xi1>
    %93 = vector.broadcast %92 : vector<16x1xi1> to vector<16x32xi1>
    %94 = vector.broadcast %cst_41 : f32 to vector<16x32xf32>
    %95 = arith.select %93, %89, %94 : vector<16x32xi1>, vector<16x32xf32>
    %c14_i32_42 = arith.constant 14 : i32
    %96 = tpu.dynamic_rotate %74 by %c14_i32_42 dim 0 : vector<16x32xf32>, i32 -> vector<16x32xf32>
    %c14_i32_43 = arith.constant 14 : i32
    %97 = vector.broadcast %c14_i32_43 : i32 to vector<16x1xi32>
    %98 = arith.cmpi slt, %4, %97 : vector<16x1xi32>
    %cst_44 = arith.constant 0.000000e+00 : f32
    %99 = vector.shape_cast %98 : vector<16x1xi1> to vector<16x1xi1>
    %100 = vector.broadcast %99 : vector<16x1xi1> to vector<16x32xi1>
    %101 = vector.broadcast %cst_44 : f32 to vector<16x32xf32>
    %102 = arith.select %100, %96, %101 : vector<16x32xi1>, vector<16x32xf32>
    %103 = tpu.concatenate %81, %88, %74, %95, %102 in 1 : vector<16x32xf32>, vector<16x32xf32>, vector<16x32xf32>, vector<16x32xf32>, vector<16x32xf32> -> vector<16x160xf32>
    %104 = arith.truncf %103 : vector<16x160xf32> to vector<16x160xbf16>
    %c80 = arith.constant 80 : index
    %c0_45 = arith.constant 0 : index
    %105 = vector.load %arg6[%c80, %c0_45] : memref<288x32xbf16, #tpu.memory_space<vmem>>, vector<160x32xbf16>
    %cst_46 = arith.constant dense<0.000000e+00> : vector<16x32xf32>
    %106 = tpu.matmul %104, %105, %cst_46 {dimension_numbers = #tpu.dot_dimension_numbers<[1], [0], [0], [1], [0, 0, 1, 1], [], []>} : vector<16x160xbf16>, vector<160x32xbf16>, vector<16x32xf32> -> vector<16x32xf32>
    %c1_47 = arith.constant 1 : index
    %c0_48 = arith.constant 0 : index
    %107 = vector.load %arg9[%c1_47, %c0_48] : memref<9x64xf32, #tpu.memory_space<vmem>>, vector<1x32xf32>
    %108 = vector.broadcast %107 : vector<1x32xf32> to vector<16x32xf32>
    %109 = arith.addf %106, %108 : vector<16x32xf32>
    %c2 = arith.constant 2 : index
    %c0_49 = arith.constant 0 : index
    %110 = vector.load %arg9[%c2, %c0_49] : memref<9x64xf32, #tpu.memory_space<vmem>>, vector<1x32xf32>
    %c3 = arith.constant 3 : index
    %c0_50 = arith.constant 0 : index
    %111 = vector.load %arg9[%c3, %c0_50] : memref<9x64xf32, #tpu.memory_space<vmem>>, vector<1x32xf32>
    %112 = arith.truncf %109 : vector<16x32xf32> to vector<16x32xbf16>
    %cst_51 = arith.constant dense<0.000000e+00> : vector<16x32xf32>
    %113 = tpu.matmul %112, %1, %cst_51 {dimension_numbers = #tpu.dot_dimension_numbers<[1], [0], [0], [1], [0, 0, 1, 1], [], []>} : vector<16x32xbf16>, vector<32x32xbf16>, vector<16x32xf32> -> vector<16x32xf32>
    %114 = arith.subf %109, %113 : vector<16x32xf32>
    %115 = arith.mulf %114, %114 : vector<16x32xf32>
    %116 = arith.truncf %115 : vector<16x32xf32> to vector<16x32xbf16>
    %cst_52 = arith.constant dense<0.000000e+00> : vector<16x32xf32>
    %117 = tpu.matmul %116, %1, %cst_52 {dimension_numbers = #tpu.dot_dimension_numbers<[1], [0], [0], [1], [0, 0, 1, 1], [], []>} : vector<16x32xbf16>, vector<32x32xbf16>, vector<16x32xf32> -> vector<16x32xf32>
    %cst_53 = arith.constant 9.99999974E-6 : f32
    %118 = vector.broadcast %cst_53 : f32 to vector<16x32xf32>
    %119 = arith.addf %117, %118 : vector<16x32xf32>
    %120 = math.rsqrt %119 : vector<16x32xf32>
    %121 = arith.mulf %114, %120 : vector<16x32xf32>
    %122 = vector.broadcast %110 : vector<1x32xf32> to vector<16x32xf32>
    %123 = arith.mulf %121, %122 : vector<16x32xf32>
    %124 = vector.broadcast %111 : vector<1x32xf32> to vector<16x32xf32>
    %125 = arith.addf %123, %124 : vector<16x32xf32>
    %cst_54 = arith.constant 2.000000e+01 : f32
    %126 = vector.broadcast %cst_54 : f32 to vector<16x32xf32>
    %127 = arith.minimumf %125, %126 : vector<16x32xf32>
    %128 = math.exp %127 : vector<16x32xf32>
    %cst_55 = arith.constant 1.000000e+00 : f32
    %129 = vector.broadcast %cst_55 : f32 to vector<16x32xf32>
    %130 = arith.addf %129, %128 : vector<16x32xf32>
    %cst_56 = arith.constant 1.000000e+00 : f32
    %131 = vector.broadcast %cst_56 : f32 to vector<16x32xf32>
    %132 = arith.addf %131, %128 : vector<16x32xf32>
    %133 = arith.mulf %130, %132 : vector<16x32xf32>
    %cst_57 = arith.constant 1.000000e+00 : f32
    %134 = vector.broadcast %cst_57 : f32 to vector<16x32xf32>
    %135 = arith.subf %133, %134 : vector<16x32xf32>
    %136 = arith.mulf %125, %135 : vector<16x32xf32>
    %cst_58 = arith.constant 1.000000e+00 : f32
    %137 = vector.broadcast %cst_58 : f32 to vector<16x32xf32>
    %138 = arith.addf %133, %137 : vector<16x32xf32>
    %139 = tpu.reciprocal %138 {approx = true} : vector<16x32xf32> -> vector<16x32xf32>
    %140 = arith.mulf %136, %139 : vector<16x32xf32>
    %141 = arith.truncf %6 : vector<16x16xf32> to vector<16x16xbf16>
    %c240 = arith.constant 240 : index
    %c0_59 = arith.constant 0 : index
    %142 = vector.load %arg6[%c240, %c0_59] : memref<288x32xbf16, #tpu.memory_space<vmem>>, vector<16x32xbf16>
    %cst_60 = arith.constant dense<0.000000e+00> : vector<16x32xf32>
    %143 = tpu.matmul %141, %142, %cst_60 {dimension_numbers = #tpu.dot_dimension_numbers<[1], [0], [0], [1], [0, 0, 1, 1], [], []>} : vector<16x16xbf16>, vector<16x32xbf16>, vector<16x32xf32> -> vector<16x32xf32>
    %c4 = arith.constant 4 : index
    %c0_61 = arith.constant 0 : index
    %144 = vector.load %arg9[%c4, %c0_61] : memref<9x64xf32, #tpu.memory_space<vmem>>, vector<1x32xf32>
    %145 = vector.broadcast %144 : vector<1x32xf32> to vector<16x32xf32>
    %146 = arith.addf %143, %145 : vector<16x32xf32>
    %147 = arith.addf %140, %146 : vector<16x32xf32>
    %cst_62 = arith.constant dense<0.000000e+00> : vector<16xf32>
    %148 = vector.multi_reduction <add>, %147, %cst_62 [1] : vector<16x32xf32> to vector<16xf32>
    %149 = vector.shape_cast %148 : vector<16xf32> to vector<16x1xf32>
    %cst_63 = arith.constant 3.200000e+01 : f32
    %150 = vector.broadcast %cst_63 : f32 to vector<16x1xf32>
    %151 = arith.divf %149, %150 : vector<16x1xf32>
    %152 = vector.broadcast %151 : vector<16x1xf32> to vector<16x32xf32>
    %153 = arith.subf %147, %152 : vector<16x32xf32>
    %154 = arith.mulf %153, %153 : vector<16x32xf32>
    %cst_64 = arith.constant dense<0.000000e+00> : vector<16xf32>
    %155 = vector.multi_reduction <add>, %154, %cst_64 [1] : vector<16x32xf32> to vector<16xf32>
    %156 = vector.shape_cast %155 : vector<16xf32> to vector<16x1xf32>
    %cst_65 = arith.constant 3.200000e+01 : f32
    %157 = vector.broadcast %cst_65 : f32 to vector<16x1xf32>
    %158 = arith.divf %156, %157 : vector<16x1xf32>
    %159 = vector.broadcast %151 : vector<16x1xf32> to vector<16x32xf32>
    %160 = arith.subf %147, %159 : vector<16x32xf32>
    %cst_66 = arith.constant 9.99999974E-6 : f32
    %161 = vector.broadcast %cst_66 : f32 to vector<16x1xf32>
    %162 = arith.addf %158, %161 : vector<16x1xf32>
    %163 = math.rsqrt %162 : vector<16x1xf32>
    %164 = vector.broadcast %163 : vector<16x1xf32> to vector<16x32xf32>
    %165 = arith.mulf %160, %164 : vector<16x32xf32>
    %c5 = arith.constant 5 : index
    %c0_67 = arith.constant 0 : index
    %166 = vector.load %arg9[%c5, %c0_67] : memref<9x64xf32, #tpu.memory_space<vmem>>, vector<1x32xf32>
    %167 = vector.broadcast %166 : vector<1x32xf32> to vector<16x32xf32>
    %168 = arith.mulf %165, %167 : vector<16x32xf32>
    %c6 = arith.constant 6 : index
    %c0_68 = arith.constant 0 : index
    %169 = vector.load %arg9[%c6, %c0_68] : memref<9x64xf32, #tpu.memory_space<vmem>>, vector<1x32xf32>
    %170 = vector.broadcast %169 : vector<1x32xf32> to vector<16x32xf32>
    %171 = arith.addf %168, %170 : vector<16x32xf32>
    %172 = arith.truncf %171 : vector<16x32xf32> to vector<16x32xbf16>
    %c256 = arith.constant 256 : index
    %c0_69 = arith.constant 0 : index
    %173 = vector.load %arg6[%c256, %c0_69] : memref<288x32xbf16, #tpu.memory_space<vmem>>, vector<32x32xbf16>
    %cst_70 = arith.constant dense<0.000000e+00> : vector<16x32xf32>
    %174 = tpu.matmul %172, %173, %cst_70 {dimension_numbers = #tpu.dot_dimension_numbers<[1], [0], [0], [1], [0, 0, 1, 1], [], []>} : vector<16x32xbf16>, vector<32x32xbf16>, vector<16x32xf32> -> vector<16x32xf32>
    %c7 = arith.constant 7 : index
    %c0_71 = arith.constant 0 : index
    %175 = vector.load %arg9[%c7, %c0_71] : memref<9x64xf32, #tpu.memory_space<vmem>>, vector<1x32xf32>
    %176 = vector.broadcast %175 : vector<1x32xf32> to vector<16x32xf32>
    %177 = arith.addf %174, %176 : vector<16x32xf32>
    %cst_72 = arith.constant dense<0xFF800000> : vector<16xf32>
    %178 = vector.multi_reduction <maximumf>, %177, %cst_72 [1] : vector<16x32xf32> to vector<16xf32>
    %179 = vector.shape_cast %178 : vector<16xf32> to vector<16x1xf32>
    %180 = vector.broadcast %179 : vector<16x1xf32> to vector<16x32xf32>
    %181 = arith.subf %177, %180 : vector<16x32xf32>
    %182 = math.exp %181 : vector<16x32xf32>
    %183 = arith.truncf %182 : vector<16x32xf32> to vector<16x32xbf16>
    %cst_73 = arith.constant dense<0.000000e+00> : vector<16x32xf32>
    %184 = tpu.matmul %183, %3, %cst_73 {dimension_numbers = #tpu.dot_dimension_numbers<[1], [0], [0], [1], [0, 0, 1, 1], [], []>} : vector<16x32xbf16>, vector<32x32xbf16>, vector<16x32xf32> -> vector<16x32xf32>
    %185 = tpu.reciprocal %184 {approx = true} : vector<16x32xf32> -> vector<16x32xf32>
    %186 = arith.mulf %182, %185 : vector<16x32xf32>
    %c0_74 = arith.constant 0 : index
    %c0_75 = arith.constant 0 : index
    %c0_76 = arith.constant 0 : index
    %187 = vector.load %arg3[%c0_74, %c0_75, %c0_76] : memref<1x8x24xf32, #tpu.memory_space<vmem>>, vector<1x8x24xf32>
    %188 = vector.shape_cast %187 : vector<1x8x24xf32> to vector<8x24xf32>
    %189 = arith.truncf %188 : vector<8x24xf32> to vector<8x24xbf16>
    %c0_77 = arith.constant 0 : index
    %c0_78 = arith.constant 0 : index
    %190 = vector.load %arg7[%c0_77, %c0_78] : memref<24x64xbf16, #tpu.memory_space<vmem>>, vector<24x64xbf16>
    %cst_79 = arith.constant dense<0.000000e+00> : vector<8x64xf32>
    %191 = tpu.matmul %189, %190, %cst_79 {dimension_numbers = #tpu.dot_dimension_numbers<[1], [0], [0], [1], [0, 0, 1, 1], [], []>} : vector<8x24xbf16>, vector<24x64xbf16>, vector<8x64xf32> -> vector<8x64xf32>
    %c8 = arith.constant 8 : index
    %c0_80 = arith.constant 0 : index
    %192 = vector.load %arg9[%c8, %c0_80] : memref<9x64xf32, #tpu.memory_space<vmem>>, vector<1x64xf32>
    %193 = vector.broadcast %192 : vector<1x64xf32> to vector<8x64xf32>
    %194 = arith.addf %191, %193 : vector<8x64xf32>
    %c1_i32_81 = arith.constant 1 : i32
    %195 = arith.muli %arg0, %c1_i32_81 : i32
    %196 = arith.extf %3 : vector<32x32xbf16> to vector<32x32xf32>
    %197 = vector.extract_strided_slice %194 {offsets = [0, 0], sizes = [8, 32], strides = [1, 1]} : vector<8x64xf32> to vector<8x32xf32>
    %198 = vector.extract_strided_slice %194 {offsets = [0, 32], sizes = [8, 32], strides = [1, 1]} : vector<8x64xf32> to vector<8x32xf32>
    %cst_82 = arith.constant dense<0xFF800000> : vector<32xf32>
    %199 = vector.multi_reduction <maximumf>, %197, %cst_82 [0] : vector<8x32xf32> to vector<32xf32>
    %200 = vector.shape_cast %199 : vector<32xf32> to vector<1x32xf32>
    %201 = vector.broadcast %200 : vector<1x32xf32> to vector<8x32xf32>
    %202 = arith.subf %197, %201 : vector<8x32xf32>
    %203 = math.exp %202 : vector<8x32xf32>
    %cst_83 = arith.constant dense<0.000000e+00> : vector<32xf32>
    %204 = vector.multi_reduction <add>, %203, %cst_83 [0] : vector<8x32xf32> to vector<32xf32>
    %205 = vector.shape_cast %204 : vector<32xf32> to vector<1x32xf32>
    %206 = tpu.reciprocal %205 {approx = true} : vector<1x32xf32> -> vector<1x32xf32>
    %207 = vector.broadcast %206 : vector<1x32xf32> to vector<8x32xf32>
    %208 = arith.mulf %203, %207 : vector<8x32xf32>
    %209 = arith.truncf %208 : vector<8x32xf32> to vector<8x32xbf16>
    %210 = arith.truncf %198 : vector<8x32xf32> to vector<8x32xbf16>
    %cst_84 = arith.constant dense<0.000000e+00> : vector<32x32xf32>
    %211 = tpu.matmul %209, %210, %cst_84 {dimension_numbers = #tpu.dot_dimension_numbers<[0], [0], [1], [1], [0, 1, 1, 1], [], []>} : vector<8x32xbf16>, vector<8x32xbf16>, vector<32x32xf32> -> vector<32x32xf32>
    %212 = arith.mulf %211, %196 : vector<32x32xf32>
    %213 = arith.truncf %186 : vector<16x32xf32> to vector<16x32xbf16>
    %214 = arith.truncf %212 : vector<32x32xf32> to vector<32x32xbf16>
    %cst_85 = arith.constant dense<0.000000e+00> : vector<16x32xf32>
    %215 = tpu.matmul %213, %214, %cst_85 {dimension_numbers = #tpu.dot_dimension_numbers<[1], [0], [0], [1], [0, 0, 1, 1], [], []>} : vector<16x32xbf16>, vector<32x32xbf16>, vector<16x32xf32> -> vector<16x32xf32>
    %c0_i32 = arith.constant 0 : i32
    %216 = arith.addi %195, %c0_i32 : i32
    %217 = arith.index_cast %216 : i32 to index
    %218 = memref.load %arg1[%217] : memref<2xi32, #tpu.memory_space<smem>>
    %219 = arith.sitofp %218 : i32 to f32
    %220 = vector.broadcast %219 : f32 to vector<16x32xf32>
    %221 = arith.mulf %220, %215 : vector<16x32xf32>
    %222 = arith.addf %147, %221 : vector<16x32xf32>
    %223 = tpu.transpose %222, [1, 0] : vector<16x32xf32> -> vector<32x16xf32>
    %c0_86 = arith.constant 0 : index
    %c0_87 = arith.constant 0 : index
    %c0_88 = arith.constant 0 : index
    %224 = vector.load %arg10[%c0_86, %c0_87, %c0_88] : memref<1x32x16xf32, #tpu.memory_space<vmem>>, vector<1x32x16xf32>
    %225 = vector.shape_cast %224 : vector<1x32x16xf32> to vector<32x16xf32>
    %226 = vector.shape_cast %223 : vector<32x16xf32> to vector<1x32x16xf32>
    tpu.vector_store %arg10[%c0_86, %c0_87, %c0_88], %226 {strides = array<i32>} : memref<1x32x16xf32, #tpu.memory_space<vmem>>, vector<1x32x16xf32>,
    return
  }
  func.func @transform_0(%arg0: i32, %arg1: memref<2xi32, #tpu.memory_space<smem>>) -> (i32, i32, i32) {
    %c0_i32 = arith.constant 0 : i32
    %c0_i32_0 = arith.constant 0 : i32
    %c0_i32_1 = arith.constant 0 : i32
    return %arg0, %c0_i32, %c0_i32_0 : i32, i32, i32
  }
  func.func @transform_1(%arg0: i32, %arg1: memref<2xi32, #tpu.memory_space<smem>>) -> (i32, i32, i32) {
    %c0_i32 = arith.constant 0 : i32
    %c0_i32_0 = arith.constant 0 : i32
    %c0_i32_1 = arith.constant 0 : i32
    return %arg0, %c0_i32, %c0_i32_0 : i32, i32, i32
  }
  func.func @transform_2(%arg0: i32, %arg1: memref<2xi32, #tpu.memory_space<smem>>) -> (i32, i32, i32) {
    %c0_i32 = arith.constant 0 : i32
    %c0_i32_0 = arith.constant 0 : i32
    %c0_i32_1 = arith.constant 0 : i32
    return %arg0, %c0_i32, %c0_i32_0 : i32, i32, i32
  }
  func.func @transform_3(%arg0: i32, %arg1: memref<2xi32, #tpu.memory_space<smem>>) -> (i32, i32, i32) {
    %c0_i32 = arith.constant 0 : i32
    %c0_i32_0 = arith.constant 0 : i32
    %c0_i32_1 = arith.constant 0 : i32
    return %arg0, %c0_i32, %c0_i32_0 : i32, i32, i32
  }
  func.func @transform_4(%arg0: i32, %arg1: memref<2xi32, #tpu.memory_space<smem>>) -> (i32, i32) {
    %c0_i32 = arith.constant 0 : i32
    %c0_i32_0 = arith.constant 0 : i32
    %c0_i32_1 = arith.constant 0 : i32
    return %c0_i32, %c0_i32_0 : i32, i32
  }
  func.func @transform_5(%arg0: i32, %arg1: memref<2xi32, #tpu.memory_space<smem>>) -> (i32, i32) {
    %c0_i32 = arith.constant 0 : i32
    %c0_i32_0 = arith.constant 0 : i32
    %c0_i32_1 = arith.constant 0 : i32
    return %c0_i32, %c0_i32_0 : i32, i32
  }
  func.func @transform_6(%arg0: i32, %arg1: memref<2xi32, #tpu.memory_space<smem>>) -> (i32, i32, i32) {
    %c0_i32 = arith.constant 0 : i32
    %c0_i32_0 = arith.constant 0 : i32
    %c0_i32_1 = arith.constant 0 : i32
    %c0_i32_2 = arith.constant 0 : i32
    return %c0_i32, %c0_i32_0, %c0_i32_1 : i32, i32, i32
  }
  func.func @transform_7(%arg0: i32, %arg1: memref<2xi32, #tpu.memory_space<smem>>) -> (i32, i32) {
    %c0_i32 = arith.constant 0 : i32
    %c0_i32_0 = arith.constant 0 : i32
    %c0_i32_1 = arith.constant 0 : i32
    return %c0_i32, %c0_i32_0 : i32, i32
  }
  func.func @transform_8(%arg0: i32, %arg1: memref<2xi32, #tpu.memory_space<smem>>) -> (i32, i32, i32) {
    %c0_i32 = arith.constant 0 : i32
    %c0_i32_0 = arith.constant 0 : i32
    %c0_i32_1 = arith.constant 0 : i32
    return %arg0, %c0_i32, %c0_i32_0 : i32, i32, i32
  }
}

</mosaic_0001>

<bundles_post_ra>
// kernel: cond_conv1d_block_forward.1
= control target key start
LH: loop header
LB: loop body
LE: loop exit
PB: predicated region body
PF: predicated region fallthrough
CT: control target
= control target key end

     0   :  { %s2346_s0 = inlined_call_operand.vmem [shape: s32[2], index: 0, kind: input, shape index: {}]   ;;  %s2347_s1 = inlined_call_operand.vmem [shape: f32[2,16,16], index: 1, kind: input, shape index: {}]   ;;  %s2348_s2 = inlined_call_operand.vmem [shape: f32[2,8,24], index: 2, kind: input, shape index: {}]   ;;  %s2349_s3 = inlined_call_operand.vmem [shape: f32[2,1,32], index: 3, kind: input, shape index: {}]   ;;  %s2350_s4 = inlined_call_operand.vmem [shape: f32[2,1,32], index: 4, kind: input, shape index: {}]   ;;  %s2351_s5 = inlined_call_operand.vmem [shape: bf16[288,32], index: 5, kind: input, shape index: {}]   ;;  %s2352_s6 = inlined_call_operand.vmem [shape: bf16[24,64], index: 6, kind: input, shape index: {}]   ;;  %s2353_s7 = inlined_call_operand.vmem [shape: bf16[2,32,32], index: 7, kind: input, shape index: {}]   ;;  %s2354_s8 = inlined_call_operand.vmem [shape: f32[9,64], index: 8, kind: input, shape index: {}]   ;;  %s2355_s9 = inlined_call_operand.vmem [shape: f32[2,32,16], index: 9, kind: output, shape index: {}]  }
   0x1   :  { %s14_s11 = sshll.u32 %s2346_s0, 4  ;;  %s15_s11 = int_to_ptr.vmem [resolvable:$true] %s14_s11 }
   0x2   :  { %s1929_s12 = scalar_lea.vmem %s15_s11, 16  ;;  %p1934_p1 = scmp.lt.s32.totalorder %s15_s11, %s15_s11 }
   0x3   :  { %p1930_p0 = scmp.ne.s32.totalorder %s15_s11, %s1929_s12  ;;  %p1935_p2 = scmp.lt.s32.totalorder %s1929_s12, %s1929_s12 }
   0x5   :  { %p1936_p3 = por %p1935_p2, %p1934_p1 }
   0x7   :  { %p1937_p4 = pnand %p1936_p3, %p1930_p0 }
   0x9   :  { %1940 = shalt.err (!%p1937_p4)  }
   0xa   :  { %s1951_s13 = smov [#allocation3]  }
   0xb   :  { %17 = dma.vmem_to_smem %s15_s11, 16, %s1951_s13, [#allocation2] }
   0xc   :  { %1945 = dma.done.wait [#allocation2], 16 }
   0xd   :  { %1946 = vsyncadd [#allocation2], 4294967280 }
   0xe   :  { %19 = sfence }
   0xf   :  { %s2013_s14 = smov 0  }
  0x10 LB: > { %s2019_s0 = sadd.s32 4294967295, %s1949_s14   ;;  %p1619_p5 = scmp.ge.s32.totalorder %s1949_s14, 1  ;;  %s1949_s14 = sphi %s2013_s14, %s25_s14  }
  0x11   : > { %p294_p6 = scmp.lt.s32.totalorder %s1949_s14, 3 }
  0x13   : > { %p295_p7 = pnand %p1619_p5, %p294_p6 }
  0x14   : > { %p338_p8 = scmp.lt.s32.totalorder (!%p295_p7), %s2019_s0, 1  ;;  %v368_v0 = vlaneseq (!%p295_p7)  ;;  %v1863_v1 = vld [vmem:[%s2351_s5] sm:$0xff] (!%p295_p7)   ;;  %v1952_v2 = vmov (!%p295_p7), 0.0   ;;  %v1864_v4 = vld [vmem:[%s2351_s5 + $0x8] sm:$0xff] (!%p295_p7)   ;;  %v1865_v6 = vld [vmem:[%s2351_s5 + $0x10] sm:$0xff] (!%p295_p7)   ;;  %s1953_s28 = smov (!%p295_p7), 16  }
  0x15   : > { %298 = sbr.rel (%p295_p7) target bundleno = 2990 (0xbae), region = 52  ;;  %1720 = vmatprep.subr.bf16.mxu0 (!%p295_p7), %v1952_v2  ;;  %1734 = vmatprep.subr.bf16.mxu1 (!%p295_p7), %v1952_v2  ;;  %v1866_v15 = vld [vmem:[%s2351_s5 + $0x18] sm:$0xff] (!%p295_p7)   ;;  %s1954_s29 = smov (!%p295_p7), 48   ;;  %v1867_v29 = vld [vmem:[%s2351_s5 + $0x20] sm:$0xff] (!%p295_p7)   ;;  %vm1955_vm6 = vmmov (!%p295_p7), 0   ;;  %vm457_vm9 = vcmask (!%p295_p7), 130048  }
  0x16   : > { %v2032_v3 = vshrl.u32 (!%p295_p7), %v368_v0, 7  ;;  %1721 = vmatpush3.bf16.msra.mxu0 (!%p295_p7), %v1863_v1  ;;  %1730 = vmatprep.mubr.msk.bf16.mxu0 (!%p295_p7), %vm1955_vm6, %v1952_v2  ;;  %s1956_s11 = smov (!%p295_p7), 32   ;;  %s1957_s12 = smov (!%p295_p7), 64   ;;  %vm460_vm10 = vcmask (!%p295_p7), 261120   ;;  %vm463_vm11 = vcmask (!%p295_p7), 392192   ;;  %vm466_vm12 = vcmask (!%p295_p7), 523264  }
  0x17   : > { %1722 = vmatprep.subr.bf16.mxu0 (!%p295_p7), %v1952_v2  ;;  %1738 = vmatprep.mubr.msk.bf16.mxu1 (!%p295_p7), %vm1955_vm6, %v1952_v2  ;;  %vm515_vm13 = vcmask (!%p295_p7), 654336   ;;  %v2121_v56 = vld [vmem:[%s2353_s7] sm:$0xff] (!%p295_p7)   ;;  %v2130_v57 = vld [vmem:[%s2353_s7 + $0x8] sm:$0xff] (!%p295_p7)   ;;  %vm760_vm14 = vcmask (!%p295_p7), 785408   ;;  %vm1289_vm15 = vcmask (!%p295_p7), 1043456  }
  0x18   : > { %v2040_v5 = vadd.s32 (!%p295_p7), 8, %v2032_v3  ;;  %vm388_vm0 = vcmp.lt.s32.totalorder (!%p295_p7), %v2032_v3, 1  ;;  %vm391_vm1 = vcmp.ge.s32.totalorder (!%p295_p7), %v2032_v3, 1  ;;  %vm401_vm2 = vcmp.lt.s32.totalorder (!%p295_p7), %v2032_v3, 7  ;;  %1735 = vmatpush3.bf16.msra.mxu1 (!%p295_p7), %v2121_v56  ;;  %v1629_v58 = vld [vmem:[%s2354_s8] ss:$0 sm:$0xff] (!%p295_p7) }
  0x19   : > { %vm414_vm4 = vcmp.lt.s32.totalorder (!%p295_p7), %v2032_v3, 6  ;;  %vm375_vm7 = vcmp.lt.s32.totalorder (!%p295_p7), %v2032_v3, 2  ;;  %vm378_vm8 = vcmp.ge.s32.totalorder (!%p295_p7), %v2032_v3, 2  ;;  %1736 = vmatprep.subr.bf16.mxu1 (!%p295_p7), %v1952_v2  ;;  %v1644_v3 = vld [vmem:[%s2354_s8 + $0x1] ss:$0 sm:$0xff] (!%p295_p7) }
  0x1a   : > { %vm405_vm3 = vcmp.lt.s32.totalorder (!%p295_p7), %v2040_v5, 15  ;;  %1723 = vmatpush3.bf16.msra.mxu0 (!%p295_p7), %v1864_v4  ;;  %vm418_vm5 = vcmp.lt.s32.totalorder (!%p295_p7), %v2040_v5, 14 }
  0x1b   : > { %1724 = vmatprep.subr.bf16.mxu0 (!%p295_p7), %v1952_v2 }
  0x1c   : > { %s2030_s17 = scalar_select %p338_p8, %s2019_s0, 1  ;;  %1737 = vmatpush3.bf16.msra.mxu1 %v2130_v57 }
  0x1d   : > { %1742 = vmatprep.subr.bf16.mxu1 %v1952_v2 }
  0x1e   : > { %s1683_s20 = sshll.u32 %s2030_s17, 4  ;;  %1725 = vmatpush3.bf16.msra.mxu0 %v1865_v6  ;;  %s1622_s26 = sshll.u32 %s2030_s17, 3 }
  0x1f   : > { %s342_s23 = scalar_lea.vmem %s2347_s1, %s1683_s20  ;;  %1726 = vmatprep.subr.bf16.mxu0 %v1952_v2  ;;  %s349_s20 = scalar_lea.vmem %s2349_s3, %s2030_s17 }
  0x20   : > { %v2051_v7 = vld [vmem:[%s342_s23] sm:$0xff]  ;;  %v2053_v8 = vld [vmem:[%s342_s23 + $0x8] sm:$0xff]  ;;  %s352_s23 = scalar_lea.vmem %s2350_s4, %s2030_s17 }
  0x21   : > { %v386_v9 = vrot.slane %v2051_v7, 7  ;;  %v387_v10 = vrot.slane %v2053_v8, 7  ;;  %v399_v11 = vrot.slane %v2051_v7, 1  ;;  %v400_v12 = vrot.slane %v2053_v8, 1 }
  0x22   : > { %v412_v13 = vrot.slane %v2051_v7, 2  ;;  %v413_v14 = vrot.slane %v2053_v8, 2  ;;  %v1833_v27 = vpack.i.bf16 %v2053_v8, %v2051_v7  ;;  %1727 = vmatpush3.bf16.msra.mxu0 %v1866_v15  ;;  %v374_v30 = vrot.slane %v2053_v8, 6 }
  0x23   : > { %v389_v16 = vsel %vm388_vm0, %v386_v9, %v387_v10  ;;  %v390_v17 = vsel %vm388_vm0, %v387_v10, %v386_v9  ;;  %v402_v18 = vsel %vm401_vm2, %v399_v11, %v400_v12  ;;  %v403_v19 = vsel %vm401_vm2, %v400_v12, %v399_v11  ;;  %1728 = vmatprep.subr.bf16.mxu0 %v1952_v2 }
  0x24   : > { %v397_v20 = vsel %vm391_vm1, %v390_v17, 0.0  ;;  %v411_v21 = vsel %vm405_vm3, %v403_v19, 0.0  ;;  %v415_v22 = vsel %vm414_vm4, %v412_v13, %v413_v14  ;;  %v416_v23 = vsel %vm414_vm4, %v413_v14, %v412_v13  ;;  %v1872_v19 = vld [vmem:[%s2351_s5 + $0x38] sm:$0xff]  }
  0x25   : > { %v1828_v24 = vpack.i.bf16 %v389_v16, %v397_v20  ;;  %v1838_v25 = vpack.i.bf16 %v411_v21, %v402_v18  ;;  %v424_v26 = vsel %vm418_vm5, %v416_v23, 0.0  ;;  %v373_v31 = vrot.slane %v2051_v7, 6  ;;  %v1870_v16 = vld [vmem:[%s2351_s5 + $0x28] sm:$0xff]   ;;  %v1871_v18 = vld [vmem:[%s2351_s5 + $0x30] sm:$0xff]   ;;  %v1873_v20 = vld [vmem:[%s2351_s5 + $0x40] sm:$0xff]  }
  0x26   : > { %v1843_v28 = vpack.i.bf16 %v424_v26, %v415_v22  ;;  %1729 = vmatpush3.bf16.msra.mxu0 %v1867_v29  ;;  %v1958_v17 = vmov 0   ;;  %v1874_v21 = vld [vmem:[%s2351_s5 + $0x48] sm:$0xff]   ;;  %v1875_v22 = vld [vmem:[%s2351_s5 + $0x50] sm:$0xff]   ;;  %v1876_v23 = vld [vmem:[%s2351_s5 + $0x58] sm:$0xff]  }
  0x27   : > { %1829 = vrot.lane.b32.xlu0 %v1828_v24, %s1953_s28  ;;  %1839 = vrot.lane.b32.xlu1 %v1838_v25, %s1954_s29  ;;  %v377_v33 = vsel %vm375_vm7, %v374_v30, %v373_v31  ;;  %v376_v37 = vsel %vm375_vm7, %v373_v31, %v374_v30  ;;  %v1640_v31 = vld [vmem:[%s349_s20] ss:$0 sm:$0xff]  ;;  %s346_s29 = scalar_lea.vmem %s2348_s2, %s1622_s26 }
  0x28   : > { %1750 = vmatprep.subr.bf16.mxu0 %v1952_v2  ;;  %v384_v38 = vsel %vm378_vm8, %v377_v33, 0.0 }
  0x2b   : > { %1834 = vrot.lane.b32.xlu0 %v1833_v27, %s1956_s11  ;;  %1844 = vrot.lane.b32.xlu1 %v1843_v28, %s1957_s12 }
  0x99   : > { %v1830_v32 = vpop.permute.xlu0 %1829  ;;  %v1840_v34 = vpop.permute.xlu1 %1839 }
  0x9a   : > { %v1832_v35 = vunpack.i.h.bf16 %v1830_v32  ;;  %v1831_v36 = vunpack.i.l.bf16 %v1830_v32  ;;  %v1842_v47 = vunpack.i.h.bf16 %v1840_v34  ;;  %v1841_v48 = vunpack.i.l.bf16 %v1840_v34  ;;  %v1641_v34 = vld [vmem:[%s352_s23] ss:$0 sm:$0xff] }
  0x9c   : > { %v458_v45 = vsel %vm457_vm9, %v384_v38, %v1831_v36  ;;  %v459_v46 = vsel %vm457_vm9, %v376_v37, %v1832_v35 }
  0x9d   : > { %v1835_v39 = vpop.permute.xlu0 %1834  ;;  %v1845_v40 = vpop.permute.xlu1 %1844 }
  0x9e   : > { %v1837_v41 = vunpack.i.h.bf16 %v1835_v39  ;;  %v1836_v42 = vunpack.i.l.bf16 %v1835_v39  ;;  %v1847_v43 = vunpack.i.h.bf16 %v1845_v40  ;;  %v1846_v44 = vunpack.i.l.bf16 %v1845_v40 }
  0xa0   : > { %v461_v49 = vsel %vm460_vm10, %v458_v45, %v1836_v42  ;;  %v462_v50 = vsel %vm460_vm10, %v459_v46, %v1837_v41 }
  0xa1   : > { %v464_v51 = vsel %vm463_vm11, %v461_v49, %v1841_v48  ;;  %v465_v52 = vsel %vm463_vm11, %v462_v50, %v1842_v47 }
  0xa2   : > { %v467_v53 = vsel %vm466_vm12, %v464_v51, %v1846_v44  ;;  %v468_v54 = vsel %vm466_vm12, %v465_v52, %v1847_v43  ;;  %v1877_v52 = vld [vmem:[%s2351_s5 + $0x60] sm:$0xff]  }
  0xa3   : > { %v469_v55 = vpack.c.bf16 %v468_v54, %v467_v53 }
  0xa5   : > { %1731 = vmatmul.mubr.msk.bf16.vlgmr.msra.gmra.mrb[0].mxu0 %vm515_vm13, %v469_v55 }
  0xa6   : > { %1754 = vmatprep.mubr.msk.bf16.mxu0 %vm1955_vm6, %v1952_v2  ;;  %1751 = vmatpush3.bf16.msra.mxu0 %v2121_v56 }
  0xa7   : > { %1752 = vmatprep.subr.bf16.mxu0 %v1952_v2 }
  0xaa   : > { %1753 = vmatpush3.bf16.msra.mxu0 %v2130_v57 }
  0xab   : > { %1758 = vmatprep.subr.bf16.mxu0 %v1952_v2 }
 0x178   : > { %v553_v59 = vpop.f32.mrb[0].mxu0 }
 0x179   : > { %v1732_v60 = vpop.f32.mrb[1].mxu0  ;;  %v554_v62 = vadd.f32 %v1629_v58, %v553_v59  ;;  %v1878_v59 = vld [vmem:[%s2351_s5 + $0x68] sm:$0xff]  }
 0x17a   : > { %v556_v61 = vpop.f32.mrb[2].mxu0 }
 0x17b   : > { %v557_v63 = vadd.f32 %v1629_v58, %v556_v61  ;;  %v1733_v0 = vpop.f32.mrb[3].mxu0 }
 0x17d   : > { %v562_v1 = vpack.c.bf16 %v557_v63, %v554_v62 }
 0x17f   : > { %1739 = vmatmul.mubr.msk.bf16.vlgmr.msra.gmra.mrb[0].mxu1 %vm460_vm10, %v562_v1 }
 0x180   : > { %1743 = vmatpush3.bf16.msra.mxu1 %v2121_v56  ;;  %1746 = vmatprep.mubr.msk.bf16.mxu1 %vm1955_vm6, %v1952_v2 }
 0x181   : > { %1744 = vmatprep.subr.bf16.mxu1 %v1952_v2 }
 0x184   : > { %1745 = vmatpush3.bf16.msra.mxu1 %v2130_v57 }
 0x185   : > { %853 = vmatprep.subr.bf16.mxu1 %v1958_v17 }
 0x252   : > { %v612_v4 = vpop.f32.mrb[0].mxu1 }
 0x253   : > { %v619_v6 = vsub.f32 %v554_v62, %v612_v4  ;;  %v1740_v9 = vpop.f32.mrb[1].mxu1 }
 0x254   : > { %v615_v10 = vpop.f32.mrb[2].mxu1 }
 0x255   : > { %v620_v11 = vsub.f32 %v557_v63, %v615_v10  ;;  %v1741_v12 = vpop.f32.mrb[3].mxu1  ;;  %v621_v13 = vmul.f32 %v619_v6, %v619_v6 }
 0x257   : > { %v622_v14 = vmul.f32 %v620_v11, %v620_v11 }
 0x259   : > { %v623_v15 = vpack.c.bf16 %v622_v14, %v621_v13 }
 0x25b   : > { %1747 = vmatmul.mubr.msk.bf16.vlgmr.msra.gmra.mrb[4].mxu1 %vm460_vm10, %v623_v15 }
 0x25c   : > { %854 = vmatpush1.bf16.msra.mxu1 %v1870_v16 }
 0x25d   : > { %855 = vmatprep.subr.bf16.mxu1 %v1958_v17 }
 0x260   : > { %856 = vmatpush1.bf16.msra.mxu1 %v1871_v18 }
 0x261   : > { %857 = vmatprep.subr.bf16.mxu1 %v1958_v17 }
 0x264   : > { %858 = vmatpush1.bf16.msra.mxu1 %v1872_v19 }
 0x265   : > { %859 = vmatprep.subr.bf16.mxu1 %v1958_v17 }
 0x268   : > { %860 = vmatpush1.bf16.msra.mxu1 %v1873_v20 }
 0x269   : > { %861 = vmatprep.subr.bf16.mxu1 %v1958_v17 }
 0x26c   : > { %862 = vmatpush1.bf16.msra.mxu1 %v1874_v21 }
 0x26d   : > { %863 = vmatprep.subr.bf16.mxu1 %v1958_v17 }
 0x270   : > { %864 = vmatpush1.bf16.msra.mxu1 %v1875_v22 }
 0x271   : > { %865 = vmatprep.subr.bf16.mxu1 %v1958_v17 }
 0x274   : > { %866 = vmatpush1.bf16.msra.mxu1 %v1876_v23 }
 0x275   : > { %867 = vmatprep.subr.bf16.mxu1 %v1958_v17 }
 0x278   : > { %868 = vmatpush1.bf16.msra.mxu1 %v1877_v52 }
 0x279   : > { %869 = vmatprep.subr.bf16.mxu1 %v1958_v17 }
 0x27c   : > { %870 = vmatpush1.bf16.msra.mxu1 %v1878_v59 }
 0x27d   : > { %871 = vmatprep.subr.bf16.mxu1 %v1958_v17 }
 0x32e   : > { %v661_v24 = vpop.f32.mrb[4].mxu1 }
 0x32f   : > { %v662_v25 = vadd.f32 1e-05, %v661_v24  ;;  %v1748_v26 = vpop.f32.mrb[5].mxu1 }
 0x330   : > { %v664_v27 = vpop.f32.mrb[6].mxu1 }
 0x331   : > { %1889 = vrsqrt.f32 %v662_v25  ;;  %v665_v28 = vadd.f32 1e-05, %v664_v27  ;;  %v1749_v29 = vpop.f32.mrb[7].mxu1 }
 0x333   : > { %1891 = vrsqrt.f32 %v665_v28 }
 0x33b   : > { %v1890_v30 = vpop.eup %1889 }
 0x33c   : > { %v670_v32 = vmul.f32 %v1890_v30, %v619_v6 }
 0x33d   : > { %v1892_v33 = vpop.eup %1891 }
 0x33e   : > { %v678_v35 = vmul.f32 %v1640_v31, %v670_v32  ;;  %v671_v36 = vmul.f32 %v1892_v33, %v620_v11  ;;  %v1879_v11 = vld [vmem:[%s2351_s5 + $0x70] sm:$0xff]  }
 0x33f   : > { %872 = vmatpush1.bf16.msra.mxu1 %v1879_v11 }
 0x340   : > { %v686_v37 = vadd.f32 %v1641_v34, %v678_v35  ;;  %v679_v38 = vmul.f32 %v1640_v31, %v671_v36  ;;  %1788 = vmatprep.subr.bf16.mxu1 %v1952_v2 }
 0x342   : > { %v688_v39 = vmin.f32 %v686_v37, 20.0  ;;  %v687_v40 = vadd.f32 %v1641_v34, %v679_v38 }
 0x344   : > { %v690_v41 = vmul.f32 1.442695, %v688_v39  ;;  %v689_v42 = vmin.f32 %v687_v40, 20.0 }
 0x346   : > { %1893 = vpow2.f32 %v690_v41  ;;  %v692_v43 = vmul.f32 1.442695, %v689_v42 }
 0x348   : > { %1895 = vpow2.f32 %v692_v43 }
 0x350   : > { %v1894_v44 = vpop.eup %1893 }
 0x351   : > { %v694_v45 = vadd.f32 1.0, %v1894_v44 }
 0x352   : > { %v1896_v46 = vpop.eup %1895 }
 0x353   : > { %v696_v47 = vmul.f32 %v694_v45, %v694_v45  ;;  %v695_v48 = vadd.f32 1.0, %v1896_v46 }
 0x355   : > { %v702_v49 = vadd.f32 1.0, %v696_v47  ;;  %v697_v50 = vmul.f32 %v695_v48, %v695_v48  ;;  %v1642_v53 = vadd.f32 -1.0, %v696_v47 }
 0x357   : > { %1897 = vrcp.f32 %v702_v49  ;;  %v703_v51 = vadd.f32 1.0, %v697_v50  ;;  %v1643_v54 = vadd.f32 -1.0, %v697_v50  ;;  %v700_v55 = vmul.f32 %v1642_v53, %v686_v37 }
 0x359   : > { %1899 = vrcp.f32 %v703_v51  ;;  %v701_v60 = vmul.f32 %v1643_v54, %v687_v40 }
 0x361   : > { %v1898_v58 = vpop.eup %1897 }
 0x362   : > { %v706_v61 = vmul.f32 %v1898_v58, %v700_v55 }
 0x363   : > { %v1900_v62 = vpop.eup %1899 }
 0x364   : > { %v707_v63 = vmul.f32 %v1900_v62, %v701_v60  ;;  %v726_v0 = vrot.slane %v706_v61, 2  ;;  %v714_v1 = vrot.slane %v706_v61, 7  ;;  %v720_v12 = vrot.slane %v706_v61, 1 }
 0x365   : > { %v708_v13 = vrot.slane %v706_v61, 6 }
 0x366   : > { %v1848_v4 = vpack.i.bf16 %v707_v63, %v706_v61  ;;  %v727_v6 = vrot.slane %v707_v63, 2  ;;  %v715_v9 = vrot.slane %v707_v63, 7  ;;  %v721_v10 = vrot.slane %v707_v63, 1 }
 0x367   : > { %v709_v14 = vrot.slane %v707_v63, 6 }
 0x368   : > { %1849 = vrot.lane.b32.xlu1 %v1848_v4, %s1957_s12  ;;  %v728_v15 = vsel %vm414_vm4, %v726_v0, %v727_v6  ;;  %v729_v16 = vsel %vm414_vm4, %v727_v6, %v726_v0  ;;  %v716_v17 = vsel %vm388_vm0, %v714_v1, %v715_v9  ;;  %v717_v18 = vsel %vm388_vm0, %v715_v9, %v714_v1  ;;  %s1959_s12 = smov 96  }
 0x369   : > { %v731_v19 = vsel %vm418_vm5, %v729_v16, 0.0  ;;  %v718_v20 = vsel %vm391_vm1, %v717_v18, 0.0  ;;  %v722_v21 = vsel %vm401_vm2, %v720_v12, %v721_v10  ;;  %v723_v22 = vsel %vm401_vm2, %v721_v10, %v720_v12  ;;  %v1659_v16 = vld [vmem:[%s2354_s8 + $0x3] ss:$0 sm:$0xff] }
 0x36a   : > { %v764_v23 = vpack.c.bf16 %v731_v19, %v728_v15  ;;  %v1853_v24 = vpack.i.bf16 %v716_v17, %v718_v20  ;;  %v725_v25 = vsel %vm405_vm3, %v723_v22, 0.0  ;;  %v710_v26 = vsel %vm375_vm7, %v708_v13, %v709_v14 }
 0x36b   : > { %v1858_v27 = vpack.i.bf16 %v725_v25, %v722_v21  ;;  %v711_v28 = vsel %vm375_vm7, %v709_v14, %v708_v13  ;;  %vm1285_vm0 = vcmask 195584   ;;  %vm1377_vm1 = vcmask 64512  }
 0x36c   : > { %1655 = vmatprep.mubr.msk.bf16.mxu1 %vm460_vm10, %v764_v23  ;;  %1854 = vrot.lane.b32.xlu0 %v1853_v24, %s1956_s11  ;;  %v712_v32 = vsel %vm378_vm8, %v711_v28, 0.0 }
 0x370   : > { %1859 = vrot.lane.b32.xlu0 %v1858_v27, %s1959_s12 }
 0x3da   : > { %v1850_v30 = vpop.permute.xlu1 %1849 }
 0x3db   : > { %v1852_v35 = vunpack.i.h.bf16 %v1850_v30  ;;  %v1851_v36 = vunpack.i.l.bf16 %v1850_v30 }
 0x3de   : > { %v1855_v29 = vpop.permute.xlu0 %1854 }
 0x3df   : > { %v1857_v5 = vunpack.i.h.bf16 %v1855_v29  ;;  %v1856_v31 = vunpack.i.l.bf16 %v1855_v29 }
 0x3e1   : > { %v756_v33 = vsel %vm460_vm10, %v712_v32, %v1856_v31  ;;  %v757_v34 = vsel %vm460_vm10, %v710_v26, %v1857_v5 }
 0x3e2   : > { %v1860_v37 = vpop.permute.xlu0 %1859  ;;  %v758_v40 = vsel %vm466_vm12, %v756_v33, %v1851_v36  ;;  %v759_v41 = vsel %vm466_vm12, %v757_v34, %v1852_v35  ;;  %v1662_v34 = vld [vmem:[%s2354_s8 + $0x4] ss:$0 sm:$0xff] }
 0x3e3   : > { %v1862_v38 = vunpack.i.h.bf16 %v1860_v37  ;;  %v1861_v39 = vunpack.i.l.bf16 %v1860_v37 }
 0x3e5   : > { %v761_v42 = vsel %vm760_vm14, %v758_v40, %v1861_v39  ;;  %v762_v43 = vsel %vm760_vm14, %v759_v41, %v1862_v38 }
 0x3e6   : > { %v763_v44 = vpack.c.bf16 %v762_v43, %v761_v42 }
 0x3e8   : > { %886 = vmatmul.mubr.bf16.vlgmr.msra.gmra.mrb[8].mxu1 %v763_v44 }
 0x3e9   : > { %1792 = vmatprep.mubr.msk.bf16.mxu1 %vm1955_vm6, %v1952_v2 }
 0x4bb   : > { %v887_v45 = vpop.f32.mrb[8].mxu1 }
 0x4bc   : > { %v889_v46 = vpop.f32.mrb[9].mxu1  ;;  %v888_v48 = vadd.f32 %v1644_v3, %v887_v45 }
 0x4bd   : > { %v890_v47 = vpop.f32.mrb[10].mxu1 }
 0x4be   : > { %v891_v49 = vadd.f32 %v1644_v3, %v890_v47  ;;  %v892_v50 = vpop.f32.mrb[11].mxu1  ;;  %v1881_v47 = vld [vmem:[%s2352_s6] sm:$0xff]  }
 0x4bf   : > { %1789 = vmatpush3.bf16.msra.mxu1 %v1881_v47 }
 0x4c0   : > { %v896_v51 = vpack.c.bf16 %v891_v49, %v888_v48  ;;  %1790 = vmatprep.subr.bf16.mxu1 %v1952_v2 }
 0x4c2   : > { %1755 = vmatmul.mubr.msk.bf16.vlgmr.msra.gmra.mrb[4].mxu0 %vm460_vm10, %v896_v51 }
 0x4c3   : > { %1759 = vmatpush3.bf16.msra.mxu0 %v2121_v56  ;;  %1762 = vmatprep.mubr.msk.bf16.mxu0 %vm1955_vm6, %v1952_v2  ;;  %v1880_v56 = vld [vmem:[%s2351_s5 + $0x78] sm:$0xff]  }
 0x4c4   : > { %1760 = vmatprep.subr.bf16.mxu0 %v1952_v2 }
 0x4c7   : > { %1761 = vmatpush3.bf16.msra.mxu0 %v2130_v57  ;;  %v1026_v57 = vpack.c.bf16 %v2053_v8, %v2051_v7  ;;  %v1658_v7 = vld [vmem:[%s2354_s8 + $0x2] ss:$0 sm:$0xff] }
 0x4c8   : > { %1766 = vmatprep.subr.bf16.mxu0 %v1952_v2 }
 0x595   : > { %v934_v52 = vpop.f32.mrb[4].mxu0 }
 0x596   : > { %v941_v53 = vsub.f32 %v888_v48, %v934_v52  ;;  %v1756_v54 = vpop.f32.mrb[5].mxu0  ;;  %v1882_v48 = vld [vmem:[%s2352_s6 + $0x8] ss:$0 sps:$4 sm:$0xff]  }
 0x597   : > { %v937_v55 = vpop.f32.mrb[6].mxu0  ;;  %v1291_v50 = vsel %vm1289_vm15, %v1882_v48, 0 }
 0x598   : > { %v942_v58 = vsub.f32 %v891_v49, %v937_v55  ;;  %v1757_v59 = vpop.f32.mrb[7].mxu0  ;;  %v943_v60 = vmul.f32 %v941_v53, %v941_v53  ;;  %v1266_v49 = vld [vmem:[%s346_s29] sm:$0xff]  ;;  %1791 = vmatpush3.bf16.msra.mxu1 %v1291_v50  ;;  %s1684_s29 = sshll.u32 %s2030_s17, 5 }
 0x599   : > { %v1267_v51 = vpack.c.bf16 %v1266_v49, %v1266_v49  ;;  %1802 = vmatprep.subr.bf16.mxu1 %v1952_v2  ;;  %s357_s10 = scalar_lea.vmem %s2355_s9, %s1684_s29 }
 0x59a   : > { %v944_v61 = vmul.f32 %v942_v58, %v942_v58 }
 0x59b   : > { %1793 = vmatmul.mubr.msk.bf16.vlgmr.msra.gmra.mrb[12].mxu1 %vm1285_vm0, %v1267_v51  ;;  %v1627_v51 = vld [vmem:[%s2353_s7 + $0x18] sm:$0xff]  }
 0x59c   : > { %v945_v62 = vpack.c.bf16 %v944_v61, %v943_v60  ;;  %1806 = vmatprep.mubr.msk.bf16.mxu1 %vm1955_vm6, %v1952_v2 }
 0x59e   : > { %1763 = vmatmul.mubr.msk.bf16.vlgmr.msra.gmra.mrb[8].mxu0 %vm460_vm10, %v945_v62 }
 0x59f   : > { %1767 = vmatpush3.bf16.msra.mxu0 %v1880_v56  ;;  %1768 = vmatprep.mubr.msk.bf16.mxu0 %vm1955_vm6, %v1952_v2 }
 0x5a0   : > { %1772 = vmatprep.subr.bf16.mxu0 %v1952_v2 }
 0x5a6   : > { %1769 = vmatmul.mubr.msk.bf16.vlgmr.msra.gmra.mrb[12].mxu0 %vm457_vm9, %v1026_v57  ;;  %v1883_v57 = vld [vmem:[%s2351_s5 + $0x80] sm:$0xff]  }
 0x5a7   : > { %1776 = vmatprep.mubr.msk.bf16.mxu0 %vm1955_vm6, %v1952_v2  ;;  %1773 = vmatpush3.bf16.msra.mxu0 %v1883_v57 }
 0x5a8   : > { %1774 = vmatprep.subr.bf16.mxu0 %v1952_v2 }
 0x671   : > { %v983_v63 = vpop.f32.mrb[8].mxu0 }
 0x672   : > { %v984_v0 = vadd.f32 1e-05, %v983_v63  ;;  %v1764_v1 = vpop.f32.mrb[9].mxu0  ;;  %v1884_v63 = vld [vmem:[%s2351_s5 + $0x88] sm:$0xff]  }
 0x673   : > { %v986_v4 = vpop.f32.mrb[10].mxu0  ;;  %1775 = vmatpush3.bf16.msra.mxu0 %v1884_v63 }
 0x674   : > { %1901 = vrsqrt.f32 %v984_v0  ;;  %v987_v6 = vadd.f32 1e-05, %v986_v4  ;;  %v1765_v9 = vpop.f32.mrb[11].mxu0  ;;  %1780 = vmatprep.subr.bf16.mxu0 %v1952_v2  ;;  %v1327_v0 = vpop.f32.mrb[12].mxu1 }
 0x675   : > { %v1794_v1 = vpop.f32.mrb[13].mxu1 }
 0x676   : > { %1903 = vrsqrt.f32 %v987_v6  ;;  %v1330_v4 = vpop.f32.mrb[14].mxu1 }
 0x677   : > { %v1795_v6 = vpop.f32.mrb[15].mxu1 }
 0x679   : > { %v1077_v10 = vpop.f32.mrb[12].mxu0 }
 0x67a   : > { %v1770_v11 = vpop.f32.mrb[13].mxu0  ;;  %v1078_v37 = vadd.f32 %v1662_v34, %v1077_v10 }
 0x67b   : > { %v1080_v12 = vpop.f32.mrb[14].mxu0 }
 0x67c   : > { %v1771_v13 = vpop.f32.mrb[15].mxu0  ;;  %v1081_v44 = vadd.f32 %v1662_v34, %v1080_v12 }
 0x67e   : > { %v1902_v14 = vpop.eup %1901 }
 0x67f   : > { %v992_v8 = vmul.f32 %v1902_v14, %v941_v53 }
 0x680   : > { %v1904_v15 = vpop.eup %1903 }
 0x681   : > { %v993_v17 = vmul.f32 %v1904_v15, %v942_v58  ;;  %v998_v18 = vmul.f32 %v1658_v7, %v992_v8  ;;  %v1665_v8 = vld [vmem:[%s2354_s8 + $0x5] ss:$0 sm:$0xff] }
 0x683   : > { %v1004_v19 = vadd.f32 %v1659_v16, %v998_v18  ;;  %v999_v20 = vmul.f32 %v1658_v7, %v993_v17 }
 0x685   : > { %v1006_v21 = vmin.f32 %v1004_v19, 20.0  ;;  %v1005_v22 = vadd.f32 %v1659_v16, %v999_v20 }
 0x687   : > { %v1008_v23 = vmul.f32 1.442695, %v1006_v21  ;;  %v1007_v24 = vmin.f32 %v1005_v22, 20.0 }
 0x689   : > { %1905 = vpow2.f32 %v1008_v23  ;;  %v1010_v25 = vmul.f32 1.442695, %v1007_v24  ;;  %v2307_v24 = vld [vmem:[%s2353_s7 + $0x10] sm:$0xff]  }
 0x68b   : > { %1907 = vpow2.f32 %v1010_v25  ;;  %v1674_v25 = vld [vmem:[%s2354_s8 + $0x8] ss:$0 sm:$0xff] }
 0x693   : > { %v1906_v26 = vpop.eup %1905 }
 0x694   : > { %v1012_v27 = vadd.f32 1.0, %v1906_v26  ;;  %v1328_v26 = vadd.f32 %v1674_v25, %v1327_v0 }
 0x695   : > { %v1908_v28 = vpop.eup %1907 }
 0x696   : > { %v1014_v29 = vmul.f32 %v1012_v27, %v1012_v27  ;;  %v1013_v30 = vadd.f32 1.0, %v1908_v28  ;;  %v1337_v27 = vsel %vm460_vm10, %v1328_v26, -inf }
 0x697   : > { %v1338_v28 = vrot.slane %v1337_v27, 4 }
 0x698   : > { %v1020_v5 = vadd.f32 1.0, %v1014_v29  ;;  %v1015_v31 = vmul.f32 %v1013_v30, %v1013_v30  ;;  %v1660_v33 = vadd.f32 -1.0, %v1014_v29 }
 0x699   : > { %v1339_v29 = vmax.f32 %v1337_v27, %v1338_v28 }
 0x69a   : > { %1909 = vrcp.f32 %v1020_v5  ;;  %v1021_v32 = vadd.f32 1.0, %v1015_v31  ;;  %v1661_v35 = vadd.f32 -1.0, %v1015_v31  ;;  %v1018_v36 = vmul.f32 %v1660_v33, %v1004_v19  ;;  %v1666_v19 = vld [vmem:[%s2354_s8 + $0x6] ss:$0 sm:$0xff] }
 0x69b   : > { %v1340_v30 = vrot.slane %v1339_v29, 2 }
 0x69c   : > { %1911 = vrcp.f32 %v1021_v32  ;;  %v1019_v40 = vmul.f32 %v1661_v35, %v1005_v22  ;;  %v1667_v35 = vld [vmem:[%s2354_s8 + $0x7] ss:$0 sm:$0xff] }
 0x69d   : > { %v1341_v5 = vmax.f32 %v1339_v29, %v1340_v30 }
 0x69f   : > { %v1342_v31 = vrot.slane %v1341_v5, 1 }
 0x6a1   : > { %v1343_v32 = vmax.f32 %v1341_v5, %v1342_v31 }
 0x6a3   : > { %v1344_v33 = vsub.f32 %v1328_v26, %v1343_v32 }
 0x6a4   : > { %v1910_v38 = vpop.eup %1909 }
 0x6a5   : > { %v1024_v39 = vmul.f32 %v1910_v38, %v1018_v36  ;;  %v1345_v34 = vmul.f32 1.442695, %v1344_v33 }
 0x6a6   : > { %v1912_v41 = vpop.eup %1911 }
 0x6a7   : > { %v2260_v42 = vadd.f32 %v1078_v37, %v1024_v39  ;;  %v1025_v43 = vmul.f32 %v1912_v41, %v1019_v40 }
 0x6a9   : > { %v2262_v3 = vadd.f32 %v1081_v44, %v1025_v43  ;;  %v1086_v45 = vsel %vm460_vm10, %v2260_v42, 0.0 }
 0x6aa   : > { %1087 = vadd.xlane.f32.xlu1 %v1086_v45 }
 0x6ab   : > { %v1089_v46 = vsel %vm460_vm10, %v2262_v3, 0.0 }
 0x6ac   : > { %1090 = vadd.xlane.f32.xlu0 %v1089_v46 }
 0x737   : > { %v1088_v52 = vpop.xlane.xlu1 %1087 }
 0x738   : > { %v1093_v53 = vmul.f32 0.03125, %v1088_v52  ;;  %v1357_v52 = vpack.c.bf16 %v1328_v26, %v1328_v26 }
 0x739   : > { %v1091_v54 = vpop.xlane.xlu0 %1090 }
 0x73a   : > { %v1095_v55 = vsub.f32 %v2260_v42, %v1093_v53  ;;  %v1094_v58 = vmul.f32 0.03125, %v1091_v54 }
 0x73c   : > { %v1096_v59 = vsub.f32 %v2262_v3, %v1094_v58  ;;  %v1097_v60 = vmul.f32 %v1095_v55, %v1095_v55 }
 0x73e   : > { %v1099_v61 = vsel %vm460_vm10, %v1097_v60, 0.0  ;;  %v1098_v56 = vmul.f32 %v1096_v59, %v1096_v59 }
 0x73f   : > { %1100 = vadd.xlane.f32.xlu0 %v1099_v61 }
 0x740   : > { %v1102_v62 = vsel %vm460_vm10, %v1098_v56, 0.0 }
 0x741   : > { %1103 = vadd.xlane.f32.xlu1 %v1102_v62 }
 0x7cc   : > { %v1101_v9 = vpop.xlane.xlu0 %1100 }
 0x7cd   : > { %v1105_v10 = vmul.f32 0.03125, %v1101_v9 }
 0x7ce   : > { %v1104_v11 = vpop.xlane.xlu1 %1103 }
 0x7cf   : > { %v1107_v12 = vadd.f32 1e-05, %v1105_v10  ;;  %v1106_v13 = vmul.f32 0.03125, %v1104_v11 }
 0x7d1   : > { %1913 = vrsqrt.f32 %v1107_v12  ;;  %v1108_v14 = vadd.f32 1e-05, %v1106_v13 }
 0x7d3   : > { %1915 = vrsqrt.f32 %v1108_v14 }
 0x7d4   : > { %1917 = vpow2.f32 %v1345_v34 }
 0x7db   : > { %v1914_v7 = vpop.eup %1913 }
 0x7dc   : > { %v1111_v15 = vmul.f32 %v1914_v7, %v1095_v55 }
 0x7dd   : > { %v1916_v16 = vpop.eup %1915 }
 0x7de   : > { %v1118_v17 = vmul.f32 %v1665_v8, %v1111_v15  ;;  %v1112_v18 = vmul.f32 %v1916_v16, %v1096_v59  ;;  %v1918_v39 = vpop.eup %1917  ;;  %v1336_v15 = vunpack.c.h.bf16 %v1627_v51 }
 0x7df   : > { %v1347_v45 = vsel %vm460_vm10, %v1918_v39, 0.0 }
 0x7e0   : > { %v1119_v20 = vmul.f32 %v1665_v8, %v1112_v18  ;;  %v1125_v21 = vadd.f32 %v1666_v19, %v1118_v17  ;;  %v1348_v47 = vrot.slane %v1347_v45, 4  ;;  %v1335_v8 = vunpack.c.l.bf16 %v1627_v51 }
 0x7e1   : > { %v1333_v17 = vunpack.c.l.bf16 %v2307_v24  ;;  %v1334_v18 = vunpack.c.h.bf16 %v2307_v24 }
 0x7e2   : > { %v1126_v22 = vadd.f32 %v1666_v19, %v1119_v20  ;;  %v1349_v48 = vadd.f32 %v1348_v47, %v1347_v45 }
 0x7e4   : > { %v1127_v23 = vpack.c.bf16 %v1126_v22, %v1125_v21  ;;  %v1350_v49 = vrot.slane %v1349_v48, 2 }
 0x7e6   : > { %1777 = vmatmul.mubr.msk.bf16.vlgmr.msra.gmra.mrb[16].mxu0 %vm460_vm10, %v1127_v23  ;;  %v1351_v50 = vadd.f32 %v1350_v49, %v1349_v48 }
 0x7e7   : > { %1784 = vmatprep.mubr.msk.bf16.mxu0 %vm1955_vm6, %v1952_v2  ;;  %1781 = vmatpush3.bf16.msra.mxu0 %v2307_v24 }
 0x7e8   : > { %1782 = vmatprep.subr.bf16.mxu0 %v1952_v2  ;;  %v1352_v53 = vrot.slane %v1351_v50, 1 }
 0x7ea   : > { %v1353_v54 = vadd.f32 %v1352_v53, %v1351_v50 }
 0x7eb   : > { %1783 = vmatpush3.bf16.msra.mxu0 %v1627_v51 }
 0x7ec   : > { %1919 = vrcp.f32 %v1353_v54 }
 0x7f6   : > { %v1920_v55 = vpop.eup %1919 }
 0x7f7   : > { %v1355_v58 = vmul.f32 %v1920_v55, %v1918_v39 }
 0x7f9   : > { %v1356_v59 = vpack.c.bf16 %v1355_v58, %v1355_v58 }
 0x8b9   : > { %v1186_v36 = vpop.f32.mrb[16].mxu0 }
 0x8ba   : > { %v1187_v37 = vadd.f32 %v1667_v35, %v1186_v36  ;;  %v1778_v38 = vpop.f32.mrb[17].mxu0 }
 0x8bb   : > { %v1189_v40 = vpop.f32.mrb[18].mxu0 }
 0x8bc   : > { %v1190_v41 = vadd.f32 %v1667_v35, %v1189_v40  ;;  %v1779_v43 = vpop.f32.mrb[19].mxu0  ;;  %v1193_v44 = vsel %vm460_vm10, %v1187_v37, -inf }
 0x8bd   : > { %1194 = vmax.xlane.f32.xlu0 %v1193_v44 }
 0x8be   : > { %v1196_v46 = vsel %vm460_vm10, %v1190_v41, -inf }
 0x8bf   : > { %1197 = vmax.xlane.f32.xlu1 %v1196_v46 }
 0x8d3   : > { %1375 = vrot.lane.b32.xlu0 %v1357_v52, %s1959_s12  ;;  %s1487_s12 = sld [smem:[#allocation3 + %s2019_s0]] }
 0x8d9   : > { %s1488_s28 = scvt.s32.f32 %s1487_s12 }
 0x8db   : > { %v1489_v24 = vstv %s1488_s28 }
 0x8ec   : > { %1358 = vxpose.xlu1.c.b16.start.end [1/1] (short) (narrow) %v1356_v59, 32 }
 0x94a   : > { %v1195_v60 = vpop.xlane.xlu0 %1194 }
 0x94b   : > { %v1199_v61 = vsub.f32 %v1187_v37, %v1195_v60 }
 0x94c   : > { %v1198_v56 = vpop.xlane.xlu1 %1197 }
 0x94d   : > { %v1201_v62 = vmul.f32 1.442695, %v1199_v61  ;;  %v1200_v57 = vsub.f32 %v1190_v41, %v1198_v56 }
 0x94e   : > { %v1376_v63 = vpop.permute.xlu0 %1375 }
 0x94f   : > { %v1203_v0 = vmul.f32 1.442695, %v1200_v57  ;;  %1810 = vmatprep.subr.msk.bf16.mxu0 %vm1289_vm15, %v1376_v63  ;;  %1921 = vpow2.f32 %v1201_v62  ;;  %v1385_v10 = vsel %vm1289_vm15, %v1376_v63, 0 }
 0x951   : > { %1923 = vpow2.f32 %v1203_v0 }
 0x952   : > { %v1366_v9 = vpop.trf.xlu1 }
 0x956   : > { %v1367_v11 = vpop.trf.xlu1 }
 0x959   : > { %v1922_v1 = vpop.eup %1921 }
 0x95b   : > { %v1924_v4 = vpop.eup %1923 }
 0x95c   : > { %v1205_v6 = vpack.c.bf16 %v1924_v4, %v1922_v1 }
 0x95e   : > { %1785 = vmatmul.mubr.msk.bf16.vlgmr.msra.gmra.mrb[20].mxu0 %vm460_vm10, %v1205_v6 }
 0x95f   : > { %1797 = vmatpush3.bf16.msra.mxu0 %v1385_v10  ;;  %1798 = vmatprep.mubr.msk.bf16.mxu0 %vm1377_vm1, %v1366_v9 }
 0x966   : > { %1799 = vmatmul.mubr.msk.bf16.vlgmr.msra.gmra.mrb[24].mxu0 %vm1377_vm1, %v1367_v11 }
 0xa31   : > { %v1255_v12 = vpop.f32.mrb[20].mxu0 }
 0xa32   : > { %1925 = vrcp.f32 %v1255_v12  ;;  %v1786_v13 = vpop.f32.mrb[21].mxu0 }
 0xa33   : > { %v1258_v14 = vpop.f32.mrb[22].mxu0 }
 0xa34   : > { %1927 = vrcp.f32 %v1258_v14  ;;  %v1787_v7 = vpop.f32.mrb[23].mxu0 }
 0xa39   : > { %v1800_v16 = vpop.f32.mrb[24].mxu0 }
 0xa3a   : > { %v1421_v19 = vpop.f32.mrb[25].mxu0  ;;  %v1438_v22 = vmul.f32 %v1800_v16, %v1335_v8 }
 0xa3b   : > { %v1801_v20 = vpop.f32.mrb[26].mxu0  ;;  %v1436_v26 = vmul.f32 %v1421_v19, %v1333_v17 }
 0xa3c   : > { %v1926_v21 = vpop.eup %1925  ;;  %v1439_v23 = vmul.f32 %v1801_v20, %v1336_v15  ;;  %v1424_v25 = vpop.f32.mrb[27].mxu0 }
 0xa3d   : > { %v1437_v27 = vmul.f32 %v1424_v25, %v1334_v18  ;;  %v1264_v30 = vmul.f32 %v1926_v21, %v1922_v1 }
 0xa3e   : > { %v1928_v28 = vpop.eup %1927  ;;  %v1442_v29 = vpack.c.bf16 %v1439_v23, %v1438_v22 }
 0xa3f   : > { %v1265_v5 = vmul.f32 %v1928_v28, %v1924_v4  ;;  %v1441_v31 = vpack.c.bf16 %v1437_v27, %v1436_v26 }
 0xa41   : > { %1803 = vmatpush3.bf16.msra.mxu1 %v1441_v31  ;;  %v1440_v32 = vpack.c.bf16 %v1265_v5, %v1264_v30 }
 0xa42   : > { %1804 = vmatprep.subr.bf16.mxu1 %v1952_v2 }
 0xa45   : > { %1805 = vmatpush3.bf16.msra.mxu1 %v1442_v29 }
 0xa48   : > { %1807 = vmatmul.mubr.msk.bf16.vlgmr.msra.gmra.mrb[16].mxu1 %vm460_vm10, %v1440_v32 }
 0xb1b   : > { %v1480_v33 = vpop.f32.mrb[16].mxu1 }
 0xb1c   : > { %v1490_v34 = vmul.f32 %v1489_v24, %v1480_v33  ;;  %v1808_v35 = vpop.f32.mrb[17].mxu1 }
 0xb1d   : > { %v1483_v36 = vpop.f32.mrb[18].mxu1 }
 0xb1e   : > { %v1491_v37 = vmul.f32 %v1489_v24, %v1483_v36  ;;  %v1809_v38 = vpop.f32.mrb[19].mxu1  ;;  %v1492_v39 = vadd.f32 %v1490_v34, %v2260_v42 }
 0xb20   : > { %1494 = vxpose.xlu0.b32.start [1/2] (short) (narrow) %v1492_v39, 32  ;;  %v1493_v40 = vadd.f32 %v1491_v37, %v2262_v3 }
 0xb24   : > { %1495 = vxpose.xlu0.b32.end [2/2] (short) (narrow) %v1493_v40, 32 }
 0xba0   : > { %v1510_v2 = vpop.trf.xlu0 }
 0xba1   : > { %1526 = vst.msk [vmem:[%s357_s10] sm:$0xff] %vm457_vm9, %v1510_v2 }
 0xba4   : > { %v1511_v41 = vpop.trf.xlu0 }
 0xba5   : > { %1527 = vst.msk [vmem:[%s357_s10 + $0x8] sm:$0xff] %vm457_vm9, %v1511_v41 }
 0xba8   : > { %v1512_v43 = vpop.trf.xlu0 }
 0xba9   : > { %1528 = vst.msk [vmem:[%s357_s10 + $0x10] sm:$0xff] %vm457_vm9, %v1512_v43 }
 0xbac   : > { %v1513_v44 = vpop.trf.xlu0 }
 0xbad   : > { %1529 = vst.msk [vmem:[%s357_s10 + $0x18] sm:$0xff] %vm457_vm9, %v1513_v44 }
 0xbae PF: > { %s25_s14 = sadd.s32 1, %s1949_s14  }
 0xbaf   : > { %p22_p9 = scmp.ge.s32.totalorder %s25_s14, 4  }
 0xbb1   :  { %24 = sbr.rel (!%p22_p9) target bundleno = 16 (0x10), region = 92 }

</bundles_post_ra>
